<compile_context>
chip_gen: v7x
topology: tpu7x:2x2x1
jax: 0.10.0
libtpu: 0.0.40
codegen_flags: <defaults>
</compile_context>

<pallas_src>
import functools

import jax
import jax.numpy as jnp
from jax import lax
from jax.experimental import pallas as pl
from jax.experimental.pallas import tpu as pltpu

LANE = 128      # lane width: K / N are padded to multiples of this
SUBLANE = 16    # bf16 sublane packing: row tiles are multiples of this


def _round_up(x, m):
    return (x + m - 1) // m * m


# ----------------------------------------------------------------------------
# Pallas kernels: fused (im2col-matmul + bias [+ ReLU] [+ residual])
# ----------------------------------------------------------------------------
def _mm_bias_act_kernel(x_ref, w_ref, b_ref, o_ref, *, relu):
    # x: (TM, Kp) bf16 row tile, w: (Kp, Np) bf16 resident, b: (1, Np) f32 resident.
    acc = jnp.dot(x_ref[...], w_ref[...], preferred_element_type=jnp.float32)
    y = acc + b_ref[...]
    if relu:
        y = jnp.maximum(y, 0.0)
    o_ref[...] = y.astype(o_ref.dtype)


def _mm_bias_act_res_kernel(x_ref, w_ref, b_ref, r_ref, o_ref, *, relu):
    acc = jnp.dot(x_ref[...], w_ref[...], preferred_element_type=jnp.float32)
    y = acc + b_ref[...]
    if relu:
        y = jnp.maximum(y, 0.0)
    y = y + r_ref[...]              # ResBlock residual, added in f32
    o_ref[...] = y.astype(o_ref.dtype)


# ----------------------------------------------------------------------------
# Wrapper: pad to TPU-friendly shapes and call the fused kernel
# ----------------------------------------------------------------------------
def fused_matmul_bias_act(x2d, w2d, b, *, relu, residual2d=None,
                          tile_rows=256, out_dtype=jnp.float32,
                          compute_dtype=jnp.bfloat16):
    """(rows, K) @ (K, N) + b  [+ ReLU] [+ residual]  ->  (rows, N)."""
    rows, K = x2d.shape
    Kw, N = w2d.shape
    assert Kw == K

    k_pad = _round_up(K, LANE)
    n_pad = _round_up(N, LANE)
    tile = min(_round_up(tile_rows, SUBLANE), _round_up(rows, SUBLANE))
    rows_pad = _round_up(rows, tile)
    grid = rows_pad // tile

    # bf16 operands halve HBM->VMEM traffic; MXU accumulates in f32.
    xp = jnp.zeros((rows_pad, k_pad), compute_dtype).at[:rows, :K].set(
        x2d.astype(compute_dtype))
    wp = jnp.zeros((k_pad, n_pad), compute_dtype).at[:K, :N].set(
        w2d.astype(compute_dtype))
    bp = jnp.zeros((1, n_pad), jnp.float32).at[0, :N].set(b.astype(jnp.float32))

    operands = [xp, wp, bp]
    in_specs = [
        pl.BlockSpec((tile, k_pad), lambda i: (i, 0)),          # row-tiled patches
        pl.BlockSpec(memory_space=pltpu.MemorySpace.VMEM),      # whole weight, resident
        pl.BlockSpec(memory_space=pltpu.MemorySpace.VMEM),      # whole bias, resident
    ]
    if residual2d is not None:
        rp = jnp.zeros((rows_pad, n_pad), jnp.float32).at[:rows, :N].set(
            residual2d.astype(jnp.float32))
        operands.append(rp)
        in_specs.append(pl.BlockSpec((tile, n_pad), lambda i: (i, 0)))
        kernel = functools.partial(_mm_bias_act_res_kernel, relu=relu)
    else:
        kernel = functools.partial(_mm_bias_act_kernel, relu=relu)

    bytes_accessed = sum(int(a.size) * a.dtype.itemsize for a in operands)
    bytes_accessed += rows_pad * n_pad * jnp.dtype(out_dtype).itemsize
    cost = pl.CostEstimate(flops=2 * rows_pad * k_pad * n_pad,
                           transcendentals=0,
                           bytes_accessed=bytes_accessed)

    out = pl.pallas_call(
        kernel,
        out_shape=jax.ShapeDtypeStruct((rows_pad, n_pad), out_dtype),
        grid=(grid,),
        in_specs=in_specs,
        out_specs=pl.BlockSpec((tile, n_pad), lambda i: (i, 0)),
        compiler_params=pltpu.CompilerParams(
            dimension_semantics=("parallel",),
            vmem_limit_bytes=64 * 1024 * 1024,
        ),
        cost_estimate=cost,
    )(*operands)
    return out[:rows, :N]


# ----------------------------------------------------------------------------
# Conv2dBlock (norm='none', pad_type='zero') = zero-pad -> conv -> [ReLU] [+res]
# ----------------------------------------------------------------------------
def _im2col_nchw(x, kh, kw, stride, pad):
    """x: (B, C, H, W) -> ((B*Ho*Wo, C*kh*kw), Ho, Wo); feature order = (c, i, j)."""
    B, C, H, W = x.shape
    Ho = (H + 2 * pad - kh) // stride + 1
    Wo = (W + 2 * pad - kw) // stride + 1
    xp = jnp.pad(x, ((0, 0), (0, 0), (pad, pad), (pad, pad)))
    cols = []
    for i in range(kh):
        for j in range(kw):
            sl = lax.slice(xp,
                           (0, 0, i, j),
                           (B, C, i + (Ho - 1) * stride + 1, j + (Wo - 1) * stride + 1),
                           (1, 1, stride, stride))
            cols.append(sl)                                    # (B, C, Ho, Wo)
    col = jnp.stack(cols, axis=2)                              # (B, C, kh*kw, Ho, Wo)
    col = col.transpose(0, 3, 4, 1, 2).reshape(B * Ho * Wo, C * kh * kw)
    return col, Ho, Wo


def conv2d_block(x, w, b, *, stride, pad, relu, residual=None, tile_rows=256):
    """x: (B, Cin, H, W) NCHW.  w: (Cout, Cin, kh, kw) (torch conv layout)."""
    B, C, H, W = x.shape
    Cout, Cin, kh, kw = w.shape
    assert Cin == C
    patches, Ho, Wo = _im2col_nchw(x, kh, kw, stride, pad)          # (B*Ho*Wo, Cin*kh*kw)
    w2d = w.transpose(1, 2, 3, 0).reshape(Cin * kh * kw, Cout)      # matches patch order
    res2d = None
    if residual is not None:
        res2d = residual.transpose(0, 2, 3, 1).reshape(B * Ho * Wo, Cout)
    y2d = fused_matmul_bias_act(patches, w2d, b, relu=relu,
                                residual2d=res2d, tile_rows=tile_rows)
    return y2d.reshape(B, Ho, Wo, Cout).transpose(0, 3, 1, 2)


# ----------------------------------------------------------------------------
# ContentEncoderUnet.forward
# ----------------------------------------------------------------------------
def content_encoder_unet_forward(x, params, *, tile_rows=256):
    """Returns [final, skip_1, skip_0] (the reversed list from the torch forward)."""
    prep_w, prep_b = params["prep"]
    t = conv2d_block(x, prep_w, prep_b, stride=1, pad=4, relu=True, tile_rows=tile_rows)

    skips = []
    for (w, b) in params["down"]:
        skips.append(t[:, :5])      # `skip_dim = 5` is hard-coded in the torch forward
        t = conv2d_block(t, w, b, stride=2, pad=2, relu=True, tile_rows=tile_rows)

    for (w1, b1, w2, b2) in params["res"]:
        h = conv2d_block(t, w1, b1, stride=1, pad=1, relu=True, tile_rows=tile_rows)
        t = conv2d_block(h, w2, b2, stride=1, pad=1, relu=False,
                         residual=t, tile_rows=tile_rows)

    output = skips + [t]
    assert len(output) == 3, "ContentEncoderUnet.forward assumes num_downsamples == 2"
    return [output[2], output[1], output[0]]


# ----------------------------------------------------------------------------
# Pure-JAX reference (mimics the kernel's bf16-input / f32-accumulation matmuls)
# ----------------------------------------------------------------------------
def reference_forward(x, params):
    def conv(x_, w, b, stride, pad, relu):
        xc = x_.astype(jnp.bfloat16).astype(jnp.float32)
        wc = w.astype(jnp.bfloat16).astype(jnp.float32)
        y = lax.conv_general_dilated(
            xc, wc, window_strides=(stride, stride),
            padding=((pad, pad), (pad, pad)),
            dimension_numbers=("NCHW", "OIHW", "NCHW"),
            precision=lax.Precision.HIGHEST)
        y = y + b.astype(jnp.float32)[None, :, None, None]
        return jnp.maximum(y, 0.0) if relu else y

    prep_w, prep_b = params["prep"]
    t = conv(x, prep_w, prep_b, 1, 4, True)
    skips = []
    for (w, b) in params["down"]:
        skips.append(t[:, :5])
        t = conv(t, w, b, 2, 2, True)
    for (w1, b1, w2, b2) in params["res"]:
        h = conv(t, w1, b1, 1, 1, True)
        t = conv(h, w2, b2, 1, 1, False) + t
    output = skips + [t]
    return [output[2], output[1], output[0]]


if __name__ == "__main__":
    B, IN_DIM, H, W = 2, 3, 16, 16
    DIM = 8
    NUM_DOWNSAMPLES = 2      # forward hard-codes a 3-element reversed output list
    NUM_BLOCKS = 1
    SKIP_DIM = 5             # hard-coded `skip_dim = 5` inside the torch forward loop

    root = jax.random.PRNGKey(0)
    keys = jax.random.split(root, 2 + NUM_DOWNSAMPLES + 2 * NUM_BLOCKS)

    def conv_params(key, cin, cout, k):
        kw_key, kb_key = jax.random.split(key)
        fan_in = cin * k * k
        w = jax.random.normal(kw_key, (cout, cin, k, k), jnp.float32) / jnp.sqrt(fan_in)
        b = 0.01 * jax.random.normal(kb_key, (cout,), jnp.float32)
        return w, b

    params = {"prep": conv_params(keys[0], IN_DIM, DIM, 9)}
    dim = DIM
    down = []
    for i in range(NUM_DOWNSAMPLES):
        down.append(conv_params(keys[1 + i], dim, 2 * dim, 6))
        dim *= 2
    params["down"] = down
    res = []
    for i in range(NUM_BLOCKS):
        w1, b1 = conv_params(keys[1 + NUM_DOWNSAMPLES + 2 * i], dim, dim, 3)
        w2, b2 = conv_params(keys[2 + NUM_DOWNSAMPLES + 2 * i], dim, dim, 3)
        res.append((w1, b1, w2, b2))
    params["res"] = res

    x = jax.random.normal(keys[-1], (B, IN_DIM, H, W), jnp.float32)

    forward = jax.jit(functools.partial(content_encoder_unet_forward, tile_rows=256))
    outs = jax.block_until_ready(forward(x, params))

    refs = reference_forward(x, params)
    expected_shapes = [
        (B, 4 * DIM, H // 4, W // 4),   # postprocessed feature map
        (B, SKIP_DIM, H // 2, W // 2),  # skip 1
        (B, SKIP_DIM, H, W),            # skip 0
    ]
    for o, r, s in zip(outs, refs, expected_shapes):
        assert o.shape == s and o.dtype == jnp.float32, (o.shape, s)
        assert jnp.allclose(o, r, atol=2e-2, rtol=2e-2), "mismatch vs reference"

    print("KERNEL_OK")
</pallas_src>

<mosaic_0001>
module attributes {stable_mosaic.version = 11 : i64} {
  func.func @_mm_bias_act_kernel(%arg0: i32, %arg1: memref<256x256xbf16, #tpu.memory_space<vmem>>, %arg2: memref<256x128xbf16, #tpu.memory_space<vmem>>, %arg3: memref<1x128xf32, #tpu.memory_space<vmem>>, %arg4: memref<256x128xf32, #tpu.memory_space<vmem>>) attributes {dimension_semantics = [#tpu.dimension_semantics<parallel>], iteration_bounds = array<i64: 2>, scalar_prefetch = 0 : i64, scratch_operands = 0 : i64, tpu.core_type = #tpu.core_type<tc>, window_params = [{transform_indices = @transform_0, window_bounds = array<i64: 256, 256>}, {pipeline_mode = #tpu.pipeline_mode<synchronous>, transform_indices = @transform_1, window_bounds = array<i64: 256, 128>}, {pipeline_mode = #tpu.pipeline_mode<synchronous>, transform_indices = @transform_2, window_bounds = array<i64: 1, 128>}, {transform_indices = @transform_3, window_bounds = array<i64: 256, 128>}]} {
    %c0 = arith.constant 0 : index
    %c0_0 = arith.constant 0 : index
    %0 = vector.load %arg1[%c0, %c0_0] : memref<256x256xbf16, #tpu.memory_space<vmem>>, vector<256x256xbf16>
    %c0_1 = arith.constant 0 : index
    %c0_2 = arith.constant 0 : index
    %1 = vector.load %arg2[%c0_1, %c0_2] : memref<256x128xbf16, #tpu.memory_space<vmem>>, vector<256x128xbf16>
    %cst = arith.constant dense<0.000000e+00> : vector<256x128xf32>
    %2 = tpu.matmul %0, %1, %cst {dimension_numbers = #tpu.dot_dimension_numbers<[1], [0], [0], [1], [0, 0, 1, 1], [], []>} : vector<256x256xbf16>, vector<256x128xbf16>, vector<256x128xf32> -> vector<256x128xf32>
    %c0_3 = arith.constant 0 : index
    %c0_4 = arith.constant 0 : index
    %3 = vector.load %arg3[%c0_3, %c0_4] : memref<1x128xf32, #tpu.memory_space<vmem>>, vector<1x128xf32>
    %4 = vector.broadcast %3 : vector<1x128xf32> to vector<256x128xf32>
    %5 = arith.addf %2, %4 : vector<256x128xf32>
    %cst_5 = arith.constant 0.000000e+00 : f32
    %6 = vector.broadcast %cst_5 : f32 to vector<256x128xf32>
    %7 = arith.maximumf %5, %6 : vector<256x128xf32>
    %c0_6 = arith.constant 0 : index
    %c0_7 = arith.constant 0 : index
    %8 = vector.load %arg4[%c0_6, %c0_7] : memref<256x128xf32, #tpu.memory_space<vmem>>, vector<256x128xf32>
    tpu.vector_store %arg4[%c0_6, %c0_7], %7 {strides = array<i32>} : memref<256x128xf32, #tpu.memory_space<vmem>>, vector<256x128xf32>,
    return
  }
  func.func @transform_0(%arg0: i32) -> (i32, i32) {
    %c0_i32 = arith.constant 0 : i32
    %c0_i32_0 = arith.constant 0 : i32
    return %arg0, %c0_i32 : i32, i32
  }
  func.func @transform_1(%arg0: i32) -> (i32, i32) {
    %c0_i32 = arith.constant 0 : i32
    %c0_i32_0 = arith.constant 0 : i32
    %c0_i32_1 = arith.constant 0 : i32
    return %c0_i32, %c0_i32_0 : i32, i32
  }
  func.func @transform_2(%arg0: i32) -> (i32, i32) {
    %c0_i32 = arith.constant 0 : i32
    %c0_i32_0 = arith.constant 0 : i32
    %c0_i32_1 = arith.constant 0 : i32
    return %c0_i32, %c0_i32_0 : i32, i32
  }
  func.func @transform_3(%arg0: i32) -> (i32, i32) {
    %c0_i32 = arith.constant 0 : i32
    %c0_i32_0 = arith.constant 0 : i32
    return %arg0, %c0_i32 : i32, i32
  }
}

module attributes {stable_mosaic.version = 11 : i64} {
  func.func @_mm_bias_act_kernel(%arg0: i32, %arg1: memref<128x384xbf16, #tpu.memory_space<vmem>>, %arg2: memref<384x128xbf16, #tpu.memory_space<vmem>>, %arg3: memref<1x128xf32, #tpu.memory_space<vmem>>, %arg4: memref<128x128xf32, #tpu.memory_space<vmem>>) attributes {dimension_semantics = [#tpu.dimension_semantics<parallel>], iteration_bounds = array<i64: 1>, scalar_prefetch = 0 : i64, scratch_operands = 0 : i64, tpu.core_type = #tpu.core_type<tc>, window_params = [{transform_indices = @transform_0, window_bounds = array<i64: 128, 384>}, {pipeline_mode = #tpu.pipeline_mode<synchronous>, transform_indices = @transform_1, window_bounds = array<i64: 384, 128>}, {pipeline_mode = #tpu.pipeline_mode<synchronous>, transform_indices = @transform_2, window_bounds = array<i64: 1, 128>}, {transform_indices = @transform_3, window_bounds = array<i64: 128, 128>}]} {
    %c0 = arith.constant 0 : index
    %c0_0 = arith.constant 0 : index
    %0 = vector.load %arg1[%c0, %c0_0] : memref<128x384xbf16, #tpu.memory_space<vmem>>, vector<128x384xbf16>
    %c0_1 = arith.constant 0 : index
    %c0_2 = arith.constant 0 : index
    %1 = vector.load %arg2[%c0_1, %c0_2] : memref<384x128xbf16, #tpu.memory_space<vmem>>, vector<384x128xbf16>
    %cst = arith.constant dense<0.000000e+00> : vector<128x128xf32>
    %2 = tpu.matmul %0, %1, %cst {dimension_numbers = #tpu.dot_dimension_numbers<[1], [0], [0], [1], [0, 0, 1, 1], [], []>} : vector<128x384xbf16>, vector<384x128xbf16>, vector<128x128xf32> -> vector<128x128xf32>
    %c0_3 = arith.constant 0 : index
    %c0_4 = arith.constant 0 : index
    %3 = vector.load %arg3[%c0_3, %c0_4] : memref<1x128xf32, #tpu.memory_space<vmem>>, vector<1x128xf32>
    %4 = vector.broadcast %3 : vector<1x128xf32> to vector<128x128xf32>
    %5 = arith.addf %2, %4 : vector<128x128xf32>
    %cst_5 = arith.constant 0.000000e+00 : f32
    %6 = vector.broadcast %cst_5 : f32 to vector<128x128xf32>
    %7 = arith.maximumf %5, %6 : vector<128x128xf32>
    %c0_6 = arith.constant 0 : index
    %c0_7 = arith.constant 0 : index
    %8 = vector.load %arg4[%c0_6, %c0_7] : memref<128x128xf32, #tpu.memory_space<vmem>>, vector<128x128xf32>
    tpu.vector_store %arg4[%c0_6, %c0_7], %7 {strides = array<i32>} : memref<128x128xf32, #tpu.memory_space<vmem>>, vector<128x128xf32>,
    return
  }
  func.func @transform_0(%arg0: i32) -> (i32, i32) {
    %c0_i32 = arith.constant 0 : i32
    %c0_i32_0 = arith.constant 0 : i32
    return %arg0, %c0_i32 : i32, i32
  }
  func.func @transform_1(%arg0: i32) -> (i32, i32) {
    %c0_i32 = arith.constant 0 : i32
    %c0_i32_0 = arith.constant 0 : i32
    %c0_i32_1 = arith.constant 0 : i32
    return %c0_i32, %c0_i32_0 : i32, i32
  }
  func.func @transform_2(%arg0: i32) -> (i32, i32) {
    %c0_i32 = arith.constant 0 : i32
    %c0_i32_0 = arith.constant 0 : i32
    %c0_i32_1 = arith.constant 0 : i32
    return %c0_i32, %c0_i32_0 : i32, i32
  }
  func.func @transform_3(%arg0: i32) -> (i32, i32) {
    %c0_i32 = arith.constant 0 : i32
    %c0_i32_0 = arith.constant 0 : i32
    return %arg0, %c0_i32 : i32, i32
  }
}

module attributes {stable_mosaic.version = 11 : i64} {
  func.func @_mm_bias_act_kernel(%arg0: i32, %arg1: memref<32x640xbf16, #tpu.memory_space<vmem>>, %arg2: memref<640x128xbf16, #tpu.memory_space<vmem>>, %arg3: memref<1x128xf32, #tpu.memory_space<vmem>>, %arg4: memref<32x128xf32, #tpu.memory_space<vmem>>) attributes {dimension_semantics = [#tpu.dimension_semantics<parallel>], iteration_bounds = array<i64: 1>, scalar_prefetch = 0 : i64, scratch_operands = 0 : i64, tpu.core_type = #tpu.core_type<tc>, window_params = [{transform_indices = @transform_0, window_bounds = array<i64: 32, 640>}, {pipeline_mode = #tpu.pipeline_mode<synchronous>, transform_indices = @transform_1, window_bounds = array<i64: 640, 128>}, {pipeline_mode = #tpu.pipeline_mode<synchronous>, transform_indices = @transform_2, window_bounds = array<i64: 1, 128>}, {transform_indices = @transform_3, window_bounds = array<i64: 32, 128>}]} {
    %c0 = arith.constant 0 : index
    %c0_0 = arith.constant 0 : index
    %0 = vector.load %arg1[%c0, %c0_0] : memref<32x640xbf16, #tpu.memory_space<vmem>>, vector<32x640xbf16>
    %c0_1 = arith.constant 0 : index
    %c0_2 = arith.constant 0 : index
    %1 = vector.load %arg2[%c0_1, %c0_2] : memref<640x128xbf16, #tpu.memory_space<vmem>>, vector<640x128xbf16>
    %cst = arith.constant dense<0.000000e+00> : vector<32x128xf32>
    %2 = tpu.matmul %0, %1, %cst {dimension_numbers = #tpu.dot_dimension_numbers<[1], [0], [0], [1], [0, 0, 1, 1], [], []>} : vector<32x640xbf16>, vector<640x128xbf16>, vector<32x128xf32> -> vector<32x128xf32>
    %c0_3 = arith.constant 0 : index
    %c0_4 = arith.constant 0 : index
    %3 = vector.load %arg3[%c0_3, %c0_4] : memref<1x128xf32, #tpu.memory_space<vmem>>, vector<1x128xf32>
    %4 = vector.broadcast %3 : vector<1x128xf32> to vector<32x128xf32>
    %5 = arith.addf %2, %4 : vector<32x128xf32>
    %cst_5 = arith.constant 0.000000e+00 : f32
    %6 = vector.broadcast %cst_5 : f32 to vector<32x128xf32>
    %7 = arith.maximumf %5, %6 : vector<32x128xf32>
    %c0_6 = arith.constant 0 : index
    %c0_7 = arith.constant 0 : index
    %8 = vector.load %arg4[%c0_6, %c0_7] : memref<32x128xf32, #tpu.memory_space<vmem>>, vector<32x128xf32>
    tpu.vector_store %arg4[%c0_6, %c0_7], %7 {strides = array<i32>} : memref<32x128xf32, #tpu.memory_space<vmem>>, vector<32x128xf32>,
    return
  }
  func.func @transform_0(%arg0: i32) -> (i32, i32) {
    %c0_i32 = arith.constant 0 : i32
    %c0_i32_0 = arith.constant 0 : i32
    return %arg0, %c0_i32 : i32, i32
  }
  func.func @transform_1(%arg0: i32) -> (i32, i32) {
    %c0_i32 = arith.constant 0 : i32
    %c0_i32_0 = arith.constant 0 : i32
    %c0_i32_1 = arith.constant 0 : i32
    return %c0_i32, %c0_i32_0 : i32, i32
  }
  func.func @transform_2(%arg0: i32) -> (i32, i32) {
    %c0_i32 = arith.constant 0 : i32
    %c0_i32_0 = arith.constant 0 : i32
    %c0_i32_1 = arith.constant 0 : i32
    return %c0_i32, %c0_i32_0 : i32, i32
  }
  func.func @transform_3(%arg0: i32) -> (i32, i32) {
    %c0_i32 = arith.constant 0 : i32
    %c0_i32_0 = arith.constant 0 : i32
    return %arg0, %c0_i32 : i32, i32
  }
}

module attributes {stable_mosaic.version = 11 : i64} {
  func.func @_mm_bias_act_kernel(%arg0: i32, %arg1: memref<32x384xbf16, #tpu.memory_space<vmem>>, %arg2: memref<384x128xbf16, #tpu.memory_space<vmem>>, %arg3: memref<1x128xf32, #tpu.memory_space<vmem>>, %arg4: memref<32x128xf32, #tpu.memory_space<vmem>>) attributes {dimension_semantics = [#tpu.dimension_semantics<parallel>], iteration_bounds = array<i64: 1>, scalar_prefetch = 0 : i64, scratch_operands = 0 : i64, tpu.core_type = #tpu.core_type<tc>, window_params = [{transform_indices = @transform_0, window_bounds = array<i64: 32, 384>}, {pipeline_mode = #tpu.pipeline_mode<synchronous>, transform_indices = @transform_1, window_bounds = array<i64: 384, 128>}, {pipeline_mode = #tpu.pipeline_mode<synchronous>, transform_indices = @transform_2, window_bounds = array<i64: 1, 128>}, {transform_indices = @transform_3, window_bounds = array<i64: 32, 128>}]} {
    %c0 = arith.constant 0 : index
    %c0_0 = arith.constant 0 : index
    %0 = vector.load %arg1[%c0, %c0_0] : memref<32x384xbf16, #tpu.memory_space<vmem>>, vector<32x384xbf16>
    %c0_1 = arith.constant 0 : index
    %c0_2 = arith.constant 0 : index
    %1 = vector.load %arg2[%c0_1, %c0_2] : memref<384x128xbf16, #tpu.memory_space<vmem>>, vector<384x128xbf16>
    %cst = arith.constant dense<0.000000e+00> : vector<32x128xf32>
    %2 = tpu.matmul %0, %1, %cst {dimension_numbers = #tpu.dot_dimension_numbers<[1], [0], [0], [1], [0, 0, 1, 1], [], []>} : vector<32x384xbf16>, vector<384x128xbf16>, vector<32x128xf32> -> vector<32x128xf32>
    %c0_3 = arith.constant 0 : index
    %c0_4 = arith.constant 0 : index
    %3 = vector.load %arg3[%c0_3, %c0_4] : memref<1x128xf32, #tpu.memory_space<vmem>>, vector<1x128xf32>
    %4 = vector.broadcast %3 : vector<1x128xf32> to vector<32x128xf32>
    %5 = arith.addf %2, %4 : vector<32x128xf32>
    %cst_5 = arith.constant 0.000000e+00 : f32
    %6 = vector.broadcast %cst_5 : f32 to vector<32x128xf32>
    %7 = arith.maximumf %5, %6 : vector<32x128xf32>
    %c0_6 = arith.constant 0 : index
    %c0_7 = arith.constant 0 : index
    %8 = vector.load %arg4[%c0_6, %c0_7] : memref<32x128xf32, #tpu.memory_space<vmem>>, vector<32x128xf32>
    tpu.vector_store %arg4[%c0_6, %c0_7], %7 {strides = array<i32>} : memref<32x128xf32, #tpu.memory_space<vmem>>, vector<32x128xf32>,
    return
  }
  func.func @transform_0(%arg0: i32) -> (i32, i32) {
    %c0_i32 = arith.constant 0 : i32
    %c0_i32_0 = arith.constant 0 : i32
    return %arg0, %c0_i32 : i32, i32
  }
  func.func @transform_1(%arg0: i32) -> (i32, i32) {
    %c0_i32 = arith.constant 0 : i32
    %c0_i32_0 = arith.constant 0 : i32
    %c0_i32_1 = arith.constant 0 : i32
    return %c0_i32, %c0_i32_0 : i32, i32
  }
  func.func @transform_2(%arg0: i32) -> (i32, i32) {
    %c0_i32 = arith.constant 0 : i32
    %c0_i32_0 = arith.constant 0 : i32
    %c0_i32_1 = arith.constant 0 : i32
    return %c0_i32, %c0_i32_0 : i32, i32
  }
  func.func @transform_3(%arg0: i32) -> (i32, i32) {
    %c0_i32 = arith.constant 0 : i32
    %c0_i32_0 = arith.constant 0 : i32
    return %arg0, %c0_i32 : i32, i32
  }
}

module attributes {stable_mosaic.version = 11 : i64} {
  func.func @_mm_bias_act_res_kernel(%arg0: i32, %arg1: memref<32x384xbf16, #tpu.memory_space<vmem>>, %arg2: memref<384x128xbf16, #tpu.memory_space<vmem>>, %arg3: memref<1x128xf32, #tpu.memory_space<vmem>>, %arg4: memref<32x128xf32, #tpu.memory_space<vmem>>, %arg5: memref<32x128xf32, #tpu.memory_space<vmem>>) attributes {dimension_semantics = [#tpu.dimension_semantics<parallel>], iteration_bounds = array<i64: 1>, scalar_prefetch = 0 : i64, scratch_operands = 0 : i64, tpu.core_type = #tpu.core_type<tc>, window_params = [{transform_indices = @transform_0, window_bounds = array<i64: 32, 384>}, {pipeline_mode = #tpu.pipeline_mode<synchronous>, transform_indices = @transform_1, window_bounds = array<i64: 384, 128>}, {pipeline_mode = #tpu.pipeline_mode<synchronous>, transform_indices = @transform_2, window_bounds = array<i64: 1, 128>}, {transform_indices = @transform_3, window_bounds = array<i64: 32, 128>}, {transform_indices = @transform_4, window_bounds = array<i64: 32, 128>}]} {
    %c0 = arith.constant 0 : index
    %c0_0 = arith.constant 0 : index
    %0 = vector.load %arg1[%c0, %c0_0] : memref<32x384xbf16, #tpu.memory_space<vmem>>, vector<32x384xbf16>
    %c0_1 = arith.constant 0 : index
    %c0_2 = arith.constant 0 : index
    %1 = vector.load %arg2[%c0_1, %c0_2] : memref<384x128xbf16, #tpu.memory_space<vmem>>, vector<384x128xbf16>
    %cst = arith.constant dense<0.000000e+00> : vector<32x128xf32>
    %2 = tpu.matmul %0, %1, %cst {dimension_numbers = #tpu.dot_dimension_numbers<[1], [0], [0], [1], [0, 0, 1, 1], [], []>} : vector<32x384xbf16>, vector<384x128xbf16>, vector<32x128xf32> -> vector<32x128xf32>
    %c0_3 = arith.constant 0 : index
    %c0_4 = arith.constant 0 : index
    %3 = vector.load %arg3[%c0_3, %c0_4] : memref<1x128xf32, #tpu.memory_space<vmem>>, vector<1x128xf32>
    %4 = vector.broadcast %3 : vector<1x128xf32> to vector<32x128xf32>
    %5 = arith.addf %2, %4 : vector<32x128xf32>
    %c0_5 = arith.constant 0 : index
    %c0_6 = arith.constant 0 : index
    %6 = vector.load %arg4[%c0_5, %c0_6] : memref<32x128xf32, #tpu.memory_space<vmem>>, vector<32x128xf32>
    %7 = arith.addf %5, %6 : vector<32x128xf32>
    %c0_7 = arith.constant 0 : index
    %c0_8 = arith.constant 0 : index
    %8 = vector.load %arg5[%c0_7, %c0_8] : memref<32x128xf32, #tpu.memory_space<vmem>>, vector<32x128xf32>
    tpu.vector_store %arg5[%c0_7, %c0_8], %7 {strides = array<i32>} : memref<32x128xf32, #tpu.memory_space<vmem>>, vector<32x128xf32>,
    return
  }
  func.func @transform_0(%arg0: i32) -> (i32, i32) {
    %c0_i32 = arith.constant 0 : i32
    %c0_i32_0 = arith.constant 0 : i32
    return %arg0, %c0_i32 : i32, i32
  }
  func.func @transform_1(%arg0: i32) -> (i32, i32) {
    %c0_i32 = arith.constant 0 : i32
    %c0_i32_0 = arith.constant 0 : i32
    %c0_i32_1 = arith.constant 0 : i32
    return %c0_i32, %c0_i32_0 : i32, i32
  }
  func.func @transform_2(%arg0: i32) -> (i32, i32) {
    %c0_i32 = arith.constant 0 : i32
    %c0_i32_0 = arith.constant 0 : i32
    %c0_i32_1 = arith.constant 0 : i32
    return %c0_i32, %c0_i32_0 : i32, i32
  }
  func.func @transform_3(%arg0: i32) -> (i32, i32) {
    %c0_i32 = arith.constant 0 : i32
    %c0_i32_0 = arith.constant 0 : i32
    return %arg0, %c0_i32 : i32, i32
  }
  func.func @transform_4(%arg0: i32) -> (i32, i32) {
    %c0_i32 = arith.constant 0 : i32
    %c0_i32_0 = arith.constant 0 : i32
    return %arg0, %c0_i32 : i32, i32
  }
}

</mosaic_0001>

<bundles_post_ra>
// kernel: content_encoder_unet_forward.5
= control target key start
LH: loop header
LB: loop body
LE: loop exit
PB: predicated region body
PF: predicated region fallthrough
CT: control target
= control target key end

     0   :  { %8 = vsyncpa [#allocation3], 0  ;;  %s1744_s0 = inlined_call_operand.hbm [shape: bf16[512,256], index: 0, kind: input, shape index: {}]   ;;  %s1745_s1 = inlined_call_operand.hbm [shape: bf16[256,128], index: 1, kind: input, shape index: {}]   ;;  %s1746_s2 = inlined_call_operand.hbm [shape: f32[1,128], index: 2, kind: input, shape index: {}]   ;;  %s1747_s3 = inlined_call_operand.hbm [shape: f32[512,128], index: 3, kind: output, shape index: {}]  }
   0x1   :  { %10 = vsyncpa [#allocation3 + $0x1], 0 }
   0x2   :  { %11 = vsyncpa [#allocation6], 0 }
   0x3   :  { %12 = vsyncpa [#allocation4], 0 }
   0x4   :  { %14 = vsyncpa [#allocation4 + $0x1], 0  ;;  %s1402_s12 = smov 0   ;;  %s1404_s13 = smov 0  }
   0x5   :  { %s1406_s14 = smov 0   ;;  %s1408_s15 = smov 0  }
   0x6 LB: > { %s1423_s16 = sadd.s32 4294967295, %s1370_s15   ;;  %s878_s17 = sadd.s32 4294967294, %s1370_s15   ;;  %s1370_s15 = sphi %s1408_s15, %s1767_s15   ;;  %s1366_s14 = sphi %s1406_s14, %s1766_s14   ;;  %s1362_s13 = sphi %s1404_s13, %s1765_s13   ;;  %s1358_s12 = sphi %s1402_s12, %s1764_s12  }
   0x7   : > { %p40_p0 = scmp.ne.s32.totalorder %s1362_s13, %s1358_s12  ;;  %p1748_p1 = scmp.eq.s32.totalorder %s1423_s16, 0 }
   0x8   : > { %p112_p3 = scmp.eq.s32.totalorder %s878_s17, 1  ;;  %p879_p5 = scmp.ge.s32.totalorder %s1370_s15, 1 }
   0x9   : > { %p1432_p4 = por %p1748_p1, %p40_p0  ;;  %p119_p7 = scmp.lt.s32.totalorder %s1370_s15, 3 }
   0xa   : > { %p1437_p6 = por %p112_p3, %p40_p0  ;;  %s1372_s21 = smov [#allocation5]  }
   0xb   : > { %s1751_s18 = scalar_select %p1432_p4, 1, 0 }
   0xc   : > { %s1752_s19 = scalar_select %p1437_p6, 1, 0 }
   0xd   : > { %p1442_p8 = pnand %p879_p5, %p119_p7  ;;  %s131_s22 = sshll.u32 %s1372_s21, 4  ;;  %s1446_s22 = int_to_ptr.vmem [resolvable:$true] %s131_s22 }
   0xe   : > { %s1373_s24 = smov [#allocation7]   ;;  %s1214_s28 = scalar_lea.hbm %s1745_s1, 2048 }
   0xf   : > { %p1089_p9 = pneg %p1442_p8  ;;  %s145_s25 = sshll.u32 %s1373_s24, 4  ;;  %s1457_s25 = int_to_ptr.vmem [resolvable:$true] %s145_s25 }
  0x10   : > { %p1215_p12 = scmp.ne.s32.totalorder %s1745_s1, %s1214_s28  ;;  %p1221_p5 = scmp.lt.u32.totalorder %s1214_s28, %s1745_s1 }
  0x11   : > { %p1453_p11 = pnand %p1089_p9, %p1748_p1 }
  0x13   : > { %p1216_p13 = pneg %p1453_p11 }
  0x15   : > { %p1217_p0 = pnand %p1216_p13, %p1215_p12 }
  0x17   : > { %p1218_p3 = pneg %p1217_p0 }
  0x19   : > { %p1223_p7 = pnand %p1221_p5, %p1218_p3 }
  0x1b   : > { %1226 = shalt.err (!%p1223_p7)
}
  0x1c   : > { %s1227_s6 = scalar_lea.vmem %s1446_s22, 2048  ;;  %p1235_p2 = scmp.lt.s32.totalorder %s1446_s22, %s1446_s22 }
  0x1d   : > { %p1228_p9 = scmp.ne.s32.totalorder %s1446_s22, %s1227_s6  ;;  %p1236_p12 = scmp.lt.s32.totalorder %s1227_s6, %s1227_s6 }
  0x1f   : > { %p1230_p10 = pnand %p1228_p9, %p1216_p13  ;;  %p1237_p0 = por %p1236_p12, %p1235_p2 }
  0x21   : > { %p1231_p1 = pneg %p1230_p10 }
  0x23   : > { %p1238_p6 = pnand %p1237_p0, %p1231_p1 }
  0x25   : > { %1241 = shalt.err (!%p1238_p6)
}
  0x26   : > { %s1374_s7 = smov 64   ;;  %s1375_s8 = smov 4  }
  0x27   : > { %1092 = dma.hbm_to_vmem [thread:$0]  (!%p1453_p11), %s1745_s1, 2048, %s1446_s22, [#allocation6], %s1374_s7, %s1374_s7, %s1375_s8  }
  0x28   : > { %s1242_s21 = scalar_lea.hbm %s1746_s2, 16 }
  0x29   : > { %p1243_p2 = scmp.ne.s32.totalorder %s1746_s2, %s1242_s21  ;;  %p1249_p10 = scmp.lt.u32.totalorder %s1242_s21, %s1746_s2 }
  0x2b   : > { %p1245_p1 = pnand %p1243_p2, %p1216_p13 }
  0x2d   : > { %p1246_p6 = pneg %p1245_p1 }
  0x2f   : > { %p1251_p3 = pnand %p1249_p10, %p1246_p6 }
  0x31   : > { %1254 = shalt.err (!%p1251_p3)
}
  0x32   : > { %s1255_s22 = scalar_lea.vmem %s1457_s25, 16  ;;  %s1262_s29 = scalar_lea.vmem %s1457_s25, 32 }
  0x33   : > { %p1256_p5 = scmp.ne.s32.totalorder %s1457_s25, %s1255_s22  ;;  %p1263_p12 = scmp.lt.s32.totalorder %s1457_s25, %s1457_s25 }
  0x34   : > { %p1264_p0 = scmp.lt.s32.totalorder %s1262_s29, %s1255_s22 }
  0x35   : > { %p1258_p7 = pnand %p1256_p5, %p1216_p13 }
  0x36   : > { %p1265_p2 = por %p1264_p0, %p1263_p12 }
  0x37   : > { %p1259_p9 = pneg %p1258_p7 }
  0x39   : > { %p1266_p1 = pnand %p1265_p2, %p1259_p9 }
  0x3b   : > { %1269 = shalt.err (!%p1266_p1)
}
  0x3c   : > { %1095 = dma.hbm_to_vmem [thread:$0]  (!%p1453_p11), %s1746_s2, 16, %s1457_s25, [#allocation6]  }
  0x3d   : > { %s1513_s5 = sadd.s32 1, %s1370_s15   ;;  %s27_s23 = sadd.s32 1, %s1366_s14 }
  0x3e   : > { %s24_s6 = ssub.s32 %s1370_s15, %s1513_s5  ;;  %p34_p13 = scmp.ne.s32.totalorder %s1366_s14, %s1362_s13 }
  0x3f   : > { %p25_p6 = scmp.eq.s32.totalorder %s24_s6, 0  ;;  %p35_p10 = scmp.eq.s32.totalorder %s1370_s15, 0 }
  0x40   : > { %p1755_p3 = scmp.eq.s32.totalorder %s1423_s16, 1  ;;  %p1106_p7 = scmp.lt.s32.totalorder %s1370_s15, 2 }
  0x41   : > { %s1529_s8 = scalar_select %p25_p6, %s1366_s14, %s27_s23  }
  0x42   : > { %p1523_p5 = por %p1755_p3, %p34_p13  ;;  %p36_p9 = por %p35_p10, %p34_p13 }
  0x43   : > { %s156_s9 = sand.u32 1, %s1366_s14   ;;  %s947_s25 = sshll.u32 %s1370_s15, 12 }
  0x44   : > { %s1756_s7 = scalar_select %p1523_p5, 1, 0 }
  0x45   : > { %s883_s10 = sshll.u32 %s156_s9, 8  ;;  %s1536_s21 = scalar_lea.hbm %s1744_s0, %s947_s25 }
  0x46   : > { %s160_s24 = scalar_lea.vmem [#allocation2], %s883_s10  ;;  %p1540_p11 = pnand %p1106_p7, %p36_p9 }
  0x47   : > { %s168_s26 = sshll.u32 %s160_s24, 4  ;;  %s1544_s28 = scalar_lea.sflag [#allocation3], %s156_s9  ;;  %s1538_s26 = int_to_ptr.vmem [resolvable:$true] %s168_s26 }
  0x48   : > { %s1270_s22 = scalar_lea.hbm %s1536_s21, 4096  ;;  %p1272_p0 = pneg %p1540_p11 }
  0x49   : > { %p1271_p12 = scmp.ne.s32.totalorder %s1536_s21, %s1270_s22  ;;  %s1275_s4 = scalar_lea.hbm %s1744_s0, 8192 }
  0x4a   : > { %p1276_p13 = scmp.lt.u32.totalorder %s1536_s21, %s1744_s0  ;;  %p1277_p6 = scmp.lt.u32.totalorder %s1275_s4, %s1270_s22 }
  0x4b   : > { %p1273_p2 = pnand %p1272_p0, %p1271_p12  ;;  %p1279_p3 = scmp.lt.u32.totalorder %s1270_s22, %s1536_s21 }
  0x4c   : > { %p1278_p10 = por %p1277_p6, %p1276_p13 }
  0x4d   : > { %p1274_p1 = pneg %p1273_p2 }
  0x4e   : > { %p1280_p7 = por %p1279_p3, %p1278_p10 }
  0x50   : > { %p1281_p9 = pnand %p1280_p7, %p1274_p1 }
  0x52   : > { %1284 = shalt.err (!%p1281_p9)
}
  0x53   : > { %s1285_s9 = scalar_lea.vmem %s1538_s26, 4096  ;;  %s1376_s10 = smov [#allocation2]  }
  0x54   : > { %p1286_p12 = scmp.ne.s32.totalorder %s1538_s26, %s1285_s9  ;;  %s1290_s25 = sshll.u32 %s1376_s10, 4  ;;  %s1291_s25 = int_to_ptr.vmem [resolvable:$false] %s1290_s25 }
  0x55   : > { %s1292_s11 = scalar_lea.vmem %s1291_s25, 8192  ;;  %p1293_p4 = scmp.lt.s32.totalorder %s1538_s26, %s1291_s25 }
  0x56   : > { %p1288_p2 = pnand %p1286_p12, %p1272_p0  ;;  %p1294_p13 = scmp.lt.s32.totalorder %s1292_s11, %s1285_s9 }
  0x58   : > { %p1289_p5 = pneg %p1288_p2  ;;  %p1295_p6 = por %p1294_p13, %p1293_p4 }
  0x5a   : > { %p1296_p10 = pnand %p1295_p6, %p1289_p5 }
  0x5c   : > { %1299 = shalt.err (!%p1296_p10)
}
  0x5d   : > { %s1377_s17 = smov 128   ;;  %s1378_s24 = smov 8  }
  0x5e   : > { %1099 = dma.hbm_to_vmem [thread:$0]  (!%p1540_p11), %s1536_s21, 4096, %s1538_s26, %s1544_s28, %s1377_s17, %s1377_s17, %s1378_s24  }
  0x5f   : > { %180 = sbr.rel (%p1442_p8) target bundleno = 431 (0x1af), region = 32  ;;  %s1575_s22 = sand.u32 (!%p1442_p8), 1, %s1362_s13  }
  0x60   : > { %s888_s29 = sshll.u32 (!%p1442_p8), %s1575_s22, 8  ;;  %s183_s30 = scalar_lea.sflag (!%p1442_p8), [#allocation3], %s1575_s22 }
  0x61   : > { %s1581_s4 = scalar_lea.vmem (!%p1442_p8), [#allocation2], %s888_s29  ;;  %p1758_p4 = scmp.ne.s32.totalorder (!%p1442_p8), %s1751_s18, 0 }
  0x66   : > { %1345 = dma.done.wait (%p1758_p4), %s183_s30, 4096  }
  0x67   : > { %1347 = vsyncadd (%p1758_p4), %s183_s30, 4294963200  ;;  %p1759_p5 = scmp.eq.s32.totalorder %s1423_s16, 0 }
  0x69   : > { %1349 = dma.done.wait (%p1759_p5), [#allocation6], 2064   ;;  %p1760_p8 = pmov %p1759_p5 }
  0x6a   : > { %v1150_v0 = vld [vmem:[#allocation5 + $0x40] sm:$0xff]   ;;  %v1152_v2 = vld [vmem:[#allocation5 + $0x48] sm:$0xff]   ;;  %v1154_v4 = vld [vmem:[#allocation5 + $0x50] sm:$0xff]   ;;  %s1631_s18 = scalar_lea.vmem [#allocation8], %s888_s29  ;;  %s948_s20 = sshll.u32 %s1423_s16, 12 }
  0x6b   : > { %1351 = vsyncadd (%p1760_p8), [#allocation6], 4294965232  ;;  %v1151_v1 = vld [vmem:[#allocation5] sm:$0xff]   ;;  %949 = vmatprep.subr.bf16.mxu0 %v1150_v0  ;;  %1061 = vmatprep.subr.bf16.mxu1 %v1150_v0  ;;  %v1153_v3 = vld [vmem:[#allocation5 + $0x8] sm:$0xff]   ;;  %s786_s21 = sshll.u32 %s1631_s18, 4  ;;  %s1694_s28 = scalar_lea.hbm %s1747_s3, %s948_s20  ;;  %s1696_s21 = int_to_ptr.vmem [resolvable:$true] %s786_s21 }
  0x6c   : > { %950 = vmatpush3.bf16.msra.mxu0 %v1151_v1  ;;  %1069 = vmatpush3.bf16.msra.mxu1 %v1151_v1  ;;  %v1155_v5 = vld [vmem:[#allocation5 + $0x10] sm:$0xff]   ;;  %v1156_v6 = vld [vmem:[#allocation5 + $0x58] sm:$0xff]   ;;  %v1158_v8 = vld [vmem:[#allocation5 + $0x60] sm:$0xff]   ;;  %s773_s16 = scalar_lea.sflag [#allocation4], %s1575_s22  ;;  %s1300_s23 = scalar_lea.vmem %s1696_s21, 4096 }
  0x6d   : > { %951 = vmatprep.subr.bf16.mxu0 %v1152_v2  ;;  %1062 = vmatprep.subr.bf16.mxu1 %v1152_v2  ;;  %v1157_v7 = vld [vmem:[#allocation5 + $0x18] sm:$0xff]   ;;  %v1159_v9 = vld [vmem:[#allocation5 + $0x20] sm:$0xff]   ;;  %v1160_v10 = vld [vmem:[#allocation5 + $0x68] sm:$0xff]   ;;  %p1301_p11 = scmp.ne.s32.totalorder %s1696_s21, %s1300_s23  ;;  %p1761_p0 = scmp.ne.s32.totalorder %s1756_s7, 0 }
  0x6e   : > { %v1168_v11 = vld [vmem:[%s1581_s4 + $0x4] ss:$8 sps:$4 sm:$0xff]   ;;  %v1162_v14 = vld [vmem:[#allocation5 + $0x70] sm:$0xff]   ;;  %v1164_v16 = vld [vmem:[#allocation5 + $0x78] sm:$0xff]   ;;  %s1379_s6 = smov [#allocation8]  }
  0x6f   : > { %v1171_v12 = vld [vmem:[%s1581_s4 + $0x84] ss:$8 sps:$4 sm:$0xff]   ;;  %579 = vmatprep.mubr.bf16.mxu0 %v1168_v11  ;;  %v1163_v15 = vld [vmem:[#allocation5 + $0x30] sm:$0xff]   ;;  %v1165_v17 = vld [vmem:[#allocation5 + $0x38] sm:$0xff]   ;;  %p1302_p1 = pnand %p1301_p11, %p1761_p0  ;;  %s1304_s9 = sshll.u32 %s1379_s6, 4  ;;  %s1305_s9 = int_to_ptr.vmem [resolvable:$false] %s1304_s9 }
  0x70   : > { %952 = vmatpush3.bf16.msra.mxu0 %v1153_v3  ;;  %1070 = vmatpush3.bf16.msra.mxu1 %v1153_v3  ;;  %v1161_v13 = vld [vmem:[#allocation5 + $0x28] sm:$0xff]   ;;  %v1172_v20 = vld [vmem:[%s1581_s4 + $0x14] ss:$8 sps:$4 sm:$0xff]   ;;  %v1176_v22 = vld [vmem:[%s1581_s4 + $0x10] ss:$8 sps:$4 sm:$0xff]   ;;  %s1306_s10 = scalar_lea.vmem %s1305_s9, 8192  ;;  %p1307_p7 = scmp.lt.s32.totalorder %s1696_s21, %s1305_s9 }
  0x71   : > { %953 = vmatprep.subr.bf16.mxu0 %v1154_v4  ;;  %1063 = vmatprep.subr.bf16.mxu1 %v1154_v4  ;;  %v1166_v18 = vld [vmem:[%s1581_s4] ss:$8 sps:$4 sm:$0xff]   ;;  %v1174_v21 = vld [vmem:[%s1581_s4 + $0x94] ss:$8 sps:$4 sm:$0xff]   ;;  %v1177_v23 = vld [vmem:[%s1581_s4 + $0x90] ss:$8 sps:$4 sm:$0xff]   ;;  %p1303_p3 = pneg %p1302_p1  ;;  %p1308_p9 = scmp.lt.s32.totalorder %s1306_s10, %s1300_s23 }
  0x72   : > { %643 = vmatprep.mubr.bf16.mxu1 %v1171_v12  ;;  %v1169_v19 = vld [vmem:[%s1581_s4 + $0x80] ss:$8 sps:$4 sm:$0xff]   ;;  %v1178_v24 = vld [vmem:[%s1581_s4 + $0x24] ss:$8 sps:$4 sm:$0xff]   ;;  %v1184_v28 = vld [vmem:[%s1581_s4 + $0x34] ss:$8 sps:$4 sm:$0xff]  }
  0x73   : > { %v1180_v25 = vld [vmem:[%s1581_s4 + $0xa4] ss:$8 sps:$4 sm:$0xff]   ;;  %v1182_v26 = vld [vmem:[%s1581_s4 + $0x20] ss:$8 sps:$4 sm:$0xff]   ;;  %v1186_v29 = vld [vmem:[%s1581_s4 + $0xb4] ss:$8 sps:$4 sm:$0xff]   ;;  %p1309_p12 = por %p1308_p9, %p1307_p7 }
  0x74   : > { %954 = vmatpush3.bf16.msra.mxu0 %v1155_v5  ;;  %1071 = vmatpush3.bf16.msra.mxu1 %v1155_v5  ;;  %v1183_v27 = vld [vmem:[%s1581_s4 + $0xa0] ss:$8 sps:$4 sm:$0xff]   ;;  %v1188_v30 = vld [vmem:[%s1581_s4 + $0x30] ss:$8 sps:$4 sm:$0xff]   ;;  %v1190_v32 = vld [vmem:[%s1581_s4 + $0x44] ss:$8 sps:$4 sm:$0xff]  }
  0x75   : > { %955 = vmatprep.subr.bf16.mxu0 %v1156_v6  ;;  %1064 = vmatprep.subr.bf16.mxu1 %v1156_v6  ;;  %v1189_v31 = vld [vmem:[%s1581_s4 + $0xb0] ss:$8 sps:$4 sm:$0xff]   ;;  %v1192_v33 = vld [vmem:[%s1581_s4 + $0xc4] ss:$8 sps:$4 sm:$0xff]   ;;  %v1194_v34 = vld [vmem:[%s1581_s4 + $0x40] ss:$8 sps:$4 sm:$0xff]   ;;  %p1310_p2 = pnand %p1309_p12, %p1303_p3 }
  0x76   : > { %v1195_v35 = vld [vmem:[%s1581_s4 + $0xc0] ss:$8 sps:$4 sm:$0xff]   ;;  %v1196_v36 = vld [vmem:[%s1581_s4 + $0x54] ss:$8 sps:$4 sm:$0xff]   ;;  %v1200_v38 = vld [vmem:[%s1581_s4 + $0x50] ss:$8 sps:$4 sm:$0xff]  }
  0x77   : > { %v1198_v37 = vld [vmem:[%s1581_s4 + $0xd4] ss:$8 sps:$4 sm:$0xff]   ;;  %v1201_v39 = vld [vmem:[%s1581_s4 + $0xd0] ss:$8 sps:$4 sm:$0xff]   ;;  %v1202_v40 = vld [vmem:[%s1581_s4 + $0x64] ss:$8 sps:$4 sm:$0xff]  }
  0x78   : > { %956 = vmatpush3.bf16.msra.mxu0 %v1157_v7  ;;  %1072 = vmatpush3.bf16.msra.mxu1 %v1157_v7  ;;  %v1204_v41 = vld [vmem:[%s1581_s4 + $0xe4] ss:$8 sps:$4 sm:$0xff]   ;;  %v1206_v42 = vld [vmem:[%s1581_s4 + $0x60] ss:$8 sps:$4 sm:$0xff]   ;;  %v1208_v44 = vld [vmem:[%s1581_s4 + $0x74] ss:$8 sps:$4 sm:$0xff]  }
  0x79   : > { %957 = vmatprep.subr.bf16.mxu0 %v1158_v8  ;;  %1065 = vmatprep.subr.bf16.mxu1 %v1158_v8  ;;  %v1207_v43 = vld [vmem:[%s1581_s4 + $0xe0] ss:$8 sps:$4 sm:$0xff]   ;;  %v1210_v45 = vld [vmem:[%s1581_s4 + $0xf4] ss:$8 sps:$4 sm:$0xff]   ;;  %v1212_v46 = vld [vmem:[%s1581_s4 + $0x70] ss:$8 sps:$4 sm:$0xff]  }
  0x7a   : > { %v1213_v47 = vld [vmem:[%s1581_s4 + $0xf0] ss:$8 sps:$4 sm:$0xff]   ;;  %v1623_v50 = vld [vmem:[#allocation7] ss:$0 sm:$0xff] }
  0x7c   : > { %958 = vmatpush3.bf16.msra.mxu0 %v1159_v9  ;;  %1073 = vmatpush3.bf16.msra.mxu1 %v1159_v9 }
  0x7d   : > { %959 = vmatprep.subr.bf16.mxu0 %v1160_v10  ;;  %1066 = vmatprep.subr.bf16.mxu1 %v1160_v10 }
  0x80   : > { %960 = vmatpush3.bf16.msra.mxu0 %v1161_v13  ;;  %1074 = vmatpush3.bf16.msra.mxu1 %v1161_v13 }
  0x81   : > { %961 = vmatprep.subr.bf16.mxu0 %v1162_v14  ;;  %1067 = vmatprep.subr.bf16.mxu1 %v1162_v14 }
  0x84   : > { %962 = vmatpush3.bf16.msra.mxu0 %v1163_v15  ;;  %1075 = vmatpush3.bf16.msra.mxu1 %v1163_v15 }
  0x85   : > { %963 = vmatprep.subr.bf16.mxu0 %v1164_v16  ;;  %1068 = vmatprep.subr.bf16.mxu1 %v1164_v16 }
  0x88   : > { %964 = vmatpush3.bf16.msra.mxu0 %v1165_v17  ;;  %1076 = vmatpush3.bf16.msra.mxu1 %v1165_v17 }
  0x8b   : > { %580 = vmatmul.mubr.bf16.vlgmr.msra.gmra.mrb[0].mxu0 %v1166_v18  ;;  %644 = vmatmul.mubr.bf16.vlgmr.msra.gmra.mrb[0].mxu1 %v1169_v19 }
  0x8c   : > { %587 = vmatprep.mubr.bf16.mxu0 %v1172_v20  ;;  %651 = vmatprep.mubr.bf16.mxu1 %v1174_v21 }
  0x93   : > { %588 = vmatmul.mubr.bf16.gmra.mrb[4].mxu0 %v1176_v22  ;;  %652 = vmatmul.mubr.bf16.gmra.mrb[4].mxu1 %v1177_v23 }
  0x94   : > { %595 = vmatprep.mubr.bf16.mxu0 %v1178_v24  ;;  %659 = vmatprep.mubr.bf16.mxu1 %v1180_v25 }
  0x9b   : > { %596 = vmatmul.mubr.bf16.gmra.mrb[8].mxu0 %v1182_v26  ;;  %660 = vmatmul.mubr.bf16.gmra.mrb[8].mxu1 %v1183_v27 }
  0x9c   : > { %603 = vmatprep.mubr.bf16.mxu0 %v1184_v28  ;;  %667 = vmatprep.mubr.bf16.mxu1 %v1186_v29 }
  0xa3   : > { %604 = vmatmul.mubr.bf16.gmra.mrb[12].mxu0 %v1188_v30  ;;  %668 = vmatmul.mubr.bf16.gmra.mrb[12].mxu1 %v1189_v31 }
  0xa4   : > { %611 = vmatprep.mubr.bf16.mxu0 %v1190_v32  ;;  %675 = vmatprep.mubr.bf16.mxu1 %v1192_v33 }
  0xab   : > { %612 = vmatmul.mubr.bf16.gmra.mrb[16].mxu0 %v1194_v34  ;;  %676 = vmatmul.mubr.bf16.gmra.mrb[16].mxu1 %v1195_v35 }
  0xac   : > { %619 = vmatprep.mubr.bf16.mxu0 %v1196_v36  ;;  %683 = vmatprep.mubr.bf16.mxu1 %v1198_v37 }
  0xb3   : > { %620 = vmatmul.mubr.bf16.gmra.mrb[20].mxu0 %v1200_v38  ;;  %684 = vmatmul.mubr.bf16.gmra.mrb[20].mxu1 %v1201_v39 }
  0xb4   : > { %627 = vmatprep.mubr.bf16.mxu0 %v1202_v40  ;;  %691 = vmatprep.mubr.bf16.mxu1 %v1204_v41 }
  0xbb   : > { %628 = vmatmul.mubr.bf16.gmra.mrb[24].mxu0 %v1206_v42  ;;  %692 = vmatmul.mubr.bf16.gmra.mrb[24].mxu1 %v1207_v43 }
  0xbc   : > { %635 = vmatprep.mubr.bf16.mxu0 %v1208_v44  ;;  %699 = vmatprep.mubr.bf16.mxu1 %v1210_v45 }
  0xc3   : > { %636 = vmatmul.mubr.bf16.gmra.mrb[28].mxu0 %v1212_v46  ;;  %700 = vmatmul.mubr.bf16.gmra.mrb[28].mxu1 %v1213_v47 }
 0x15e   : > { %v965_v48 = vpop.f32.mrb[0].mxu0  ;;  %v1013_v49 = vpop.f32.mrb[0].mxu1 }
 0x15f   : > { %v966_v51 = vpop.f32.mrb[1].mxu0  ;;  %v1014_v52 = vpop.f32.mrb[1].mxu1 }
 0x160   : > { %v967_v53 = vadd.f32 %v966_v51, %v965_v48  ;;  %v1015_v54 = vadd.f32 %v1014_v52, %v1013_v49  ;;  %v968_v55 = vpop.f32.mrb[2].mxu0  ;;  %v1016_v56 = vpop.f32.mrb[2].mxu1 }
 0x161   : > { %v969_v57 = vpop.f32.mrb[3].mxu0  ;;  %v1017_v58 = vpop.f32.mrb[3].mxu1 }
 0x162   : > { %v582_v59 = vadd.f32 %v967_v53, %v1623_v50  ;;  %v646_v60 = vadd.f32 %v1015_v54, %v1623_v50  ;;  %v970_v61 = vadd.f32 %v969_v57, %v968_v55  ;;  %v1018_v62 = vadd.f32 %v1017_v58, %v1016_v56 }
 0x164   : > { %v708_v63 = vmax.f32 %v582_v59, 0.0  ;;  %v724_v0 = vmax.f32 %v646_v60, 0.0  ;;  %v585_v1 = vadd.f32 %v970_v61, %v1623_v50  ;;  %v649_v2 = vadd.f32 %v1018_v62, %v1623_v50 }
 0x166   : > { %740 = vst [vmem:[%s1631_s18] sm:$0xff] %v708_v63  ;;  %756 = vst [vmem:[%s1631_s18 + $0x80] sm:$0xff] %v724_v0  ;;  %v709_v3 = vmax.f32 %v585_v1, 0.0  ;;  %v725_v4 = vmax.f32 %v649_v2, 0.0  ;;  %v971_v5 = vpop.f32.mrb[4].mxu0  ;;  %v1019_v6 = vpop.f32.mrb[4].mxu1 }
 0x167   : > { %v972_v7 = vpop.f32.mrb[5].mxu0  ;;  %v1020_v8 = vpop.f32.mrb[5].mxu1 }
 0x168   : > { %741 = vst [vmem:[%s1631_s18 + $0x8] sm:$0xff] %v709_v3  ;;  %757 = vst [vmem:[%s1631_s18 + $0x88] sm:$0xff] %v725_v4  ;;  %v973_v9 = vadd.f32 %v972_v7, %v971_v5  ;;  %v1021_v10 = vadd.f32 %v1020_v8, %v1019_v6  ;;  %v974_v11 = vpop.f32.mrb[6].mxu0  ;;  %v1022_v12 = vpop.f32.mrb[6].mxu1 }
 0x169   : > { %v975_v13 = vpop.f32.mrb[7].mxu0  ;;  %v1023_v14 = vpop.f32.mrb[7].mxu1 }
 0x16a   : > { %v590_v15 = vadd.f32 %v973_v9, %v1623_v50  ;;  %v654_v16 = vadd.f32 %v1021_v10, %v1623_v50  ;;  %v976_v17 = vadd.f32 %v975_v13, %v974_v11  ;;  %v1024_v18 = vadd.f32 %v1023_v14, %v1022_v12 }
 0x16c   : > { %v710_v19 = vmax.f32 %v590_v15, 0.0  ;;  %v726_v20 = vmax.f32 %v654_v16, 0.0  ;;  %v593_v21 = vadd.f32 %v976_v17, %v1623_v50  ;;  %v657_v22 = vadd.f32 %v1024_v18, %v1623_v50 }
 0x16e   : > { %742 = vst [vmem:[%s1631_s18 + $0x10] sm:$0xff] %v710_v19  ;;  %758 = vst [vmem:[%s1631_s18 + $0x90] sm:$0xff] %v726_v20  ;;  %v711_v23 = vmax.f32 %v593_v21, 0.0  ;;  %v727_v24 = vmax.f32 %v657_v22, 0.0  ;;  %v977_v25 = vpop.f32.mrb[8].mxu0  ;;  %v1025_v26 = vpop.f32.mrb[8].mxu1 }
 0x16f   : > { %v978_v27 = vpop.f32.mrb[9].mxu0  ;;  %v1026_v28 = vpop.f32.mrb[9].mxu1 }
 0x170   : > { %743 = vst [vmem:[%s1631_s18 + $0x18] sm:$0xff] %v711_v23  ;;  %759 = vst [vmem:[%s1631_s18 + $0x98] sm:$0xff] %v727_v24  ;;  %v979_v29 = vadd.f32 %v978_v27, %v977_v25  ;;  %v1027_v30 = vadd.f32 %v1026_v28, %v1025_v26  ;;  %v980_v31 = vpop.f32.mrb[10].mxu0  ;;  %v1028_v32 = vpop.f32.mrb[10].mxu1 }
 0x171   : > { %v981_v33 = vpop.f32.mrb[11].mxu0  ;;  %v1029_v34 = vpop.f32.mrb[11].mxu1 }
 0x172   : > { %v598_v35 = vadd.f32 %v979_v29, %v1623_v50  ;;  %v662_v36 = vadd.f32 %v1027_v30, %v1623_v50  ;;  %v982_v37 = vadd.f32 %v981_v33, %v980_v31  ;;  %v1030_v38 = vadd.f32 %v1029_v34, %v1028_v32 }
 0x174   : > { %v712_v39 = vmax.f32 %v598_v35, 0.0  ;;  %v728_v40 = vmax.f32 %v662_v36, 0.0  ;;  %v601_v41 = vadd.f32 %v982_v37, %v1623_v50  ;;  %v665_v42 = vadd.f32 %v1030_v38, %v1623_v50 }
 0x176   : > { %744 = vst [vmem:[%s1631_s18 + $0x20] sm:$0xff] %v712_v39  ;;  %760 = vst [vmem:[%s1631_s18 + $0xa0] sm:$0xff] %v728_v40  ;;  %v713_v43 = vmax.f32 %v601_v41, 0.0  ;;  %v729_v44 = vmax.f32 %v665_v42, 0.0  ;;  %v983_v45 = vpop.f32.mrb[12].mxu0  ;;  %v1031_v46 = vpop.f32.mrb[12].mxu1 }
 0x177   : > { %v984_v47 = vpop.f32.mrb[13].mxu0  ;;  %v1032_v48 = vpop.f32.mrb[13].mxu1 }
 0x178   : > { %745 = vst [vmem:[%s1631_s18 + $0x28] sm:$0xff] %v713_v43  ;;  %761 = vst [vmem:[%s1631_s18 + $0xa8] sm:$0xff] %v729_v44  ;;  %v985_v49 = vadd.f32 %v984_v47, %v983_v45  ;;  %v1033_v51 = vadd.f32 %v1032_v48, %v1031_v46  ;;  %v986_v52 = vpop.f32.mrb[14].mxu0  ;;  %v1034_v53 = vpop.f32.mrb[14].mxu1 }
 0x179   : > { %v987_v54 = vpop.f32.mrb[15].mxu0  ;;  %v1035_v55 = vpop.f32.mrb[15].mxu1 }
 0x17a   : > { %v606_v56 = vadd.f32 %v985_v49, %v1623_v50  ;;  %v670_v57 = vadd.f32 %v1033_v51, %v1623_v50  ;;  %v988_v58 = vadd.f32 %v987_v54, %v986_v52  ;;  %v1036_v59 = vadd.f32 %v1035_v55, %v1034_v53 }
 0x17c   : > { %v714_v60 = vmax.f32 %v606_v56, 0.0  ;;  %v730_v61 = vmax.f32 %v670_v57, 0.0  ;;  %v609_v62 = vadd.f32 %v988_v58, %v1623_v50  ;;  %v673_v63 = vadd.f32 %v1036_v59, %v1623_v50 }
 0x17e   : > { %746 = vst [vmem:[%s1631_s18 + $0x30] sm:$0xff] %v714_v60  ;;  %762 = vst [vmem:[%s1631_s18 + $0xb0] sm:$0xff] %v730_v61  ;;  %v715_v0 = vmax.f32 %v609_v62, 0.0  ;;  %v731_v1 = vmax.f32 %v673_v63, 0.0  ;;  %v989_v2 = vpop.f32.mrb[16].mxu0  ;;  %v1037_v3 = vpop.f32.mrb[16].mxu1 }
 0x17f   : > { %v990_v4 = vpop.f32.mrb[17].mxu0  ;;  %v1038_v5 = vpop.f32.mrb[17].mxu1 }
 0x180   : > { %747 = vst [vmem:[%s1631_s18 + $0x38] sm:$0xff] %v715_v0  ;;  %763 = vst [vmem:[%s1631_s18 + $0xb8] sm:$0xff] %v731_v1  ;;  %v991_v6 = vadd.f32 %v990_v4, %v989_v2  ;;  %v1039_v7 = vadd.f32 %v1038_v5, %v1037_v3  ;;  %v992_v8 = vpop.f32.mrb[18].mxu0  ;;  %v1040_v9 = vpop.f32.mrb[18].mxu1 }
 0x181   : > { %v993_v10 = vpop.f32.mrb[19].mxu0  ;;  %v1041_v11 = vpop.f32.mrb[19].mxu1 }
 0x182   : > { %v614_v12 = vadd.f32 %v991_v6, %v1623_v50  ;;  %v678_v13 = vadd.f32 %v1039_v7, %v1623_v50  ;;  %v994_v14 = vadd.f32 %v993_v10, %v992_v8  ;;  %v1042_v15 = vadd.f32 %v1041_v11, %v1040_v9 }
 0x184   : > { %v716_v16 = vmax.f32 %v614_v12, 0.0  ;;  %v732_v17 = vmax.f32 %v678_v13, 0.0  ;;  %v617_v18 = vadd.f32 %v994_v14, %v1623_v50  ;;  %v681_v19 = vadd.f32 %v1042_v15, %v1623_v50 }
 0x186   : > { %748 = vst [vmem:[%s1631_s18 + $0x40] sm:$0xff] %v716_v16  ;;  %764 = vst [vmem:[%s1631_s18 + $0xc0] sm:$0xff] %v732_v17  ;;  %v717_v20 = vmax.f32 %v617_v18, 0.0  ;;  %v733_v21 = vmax.f32 %v681_v19, 0.0  ;;  %v995_v22 = vpop.f32.mrb[20].mxu0  ;;  %v1043_v23 = vpop.f32.mrb[20].mxu1 }
 0x187   : > { %v996_v24 = vpop.f32.mrb[21].mxu0  ;;  %v1044_v25 = vpop.f32.mrb[21].mxu1 }
 0x188   : > { %749 = vst [vmem:[%s1631_s18 + $0x48] sm:$0xff] %v717_v20  ;;  %765 = vst [vmem:[%s1631_s18 + $0xc8] sm:$0xff] %v733_v21  ;;  %v997_v26 = vadd.f32 %v996_v24, %v995_v22  ;;  %v1045_v27 = vadd.f32 %v1044_v25, %v1043_v23  ;;  %v998_v28 = vpop.f32.mrb[22].mxu0  ;;  %v1046_v29 = vpop.f32.mrb[22].mxu1 }
 0x189   : > { %v999_v30 = vpop.f32.mrb[23].mxu0  ;;  %v1047_v31 = vpop.f32.mrb[23].mxu1 }
 0x18a   : > { %v622_v32 = vadd.f32 %v997_v26, %v1623_v50  ;;  %v686_v33 = vadd.f32 %v1045_v27, %v1623_v50  ;;  %v1000_v34 = vadd.f32 %v999_v30, %v998_v28  ;;  %v1048_v35 = vadd.f32 %v1047_v31, %v1046_v29 }
 0x18c   : > { %v718_v36 = vmax.f32 %v622_v32, 0.0  ;;  %v734_v37 = vmax.f32 %v686_v33, 0.0  ;;  %v625_v38 = vadd.f32 %v1000_v34, %v1623_v50  ;;  %v689_v39 = vadd.f32 %v1048_v35, %v1623_v50 }
 0x18e   : > { %750 = vst [vmem:[%s1631_s18 + $0x50] sm:$0xff] %v718_v36  ;;  %766 = vst [vmem:[%s1631_s18 + $0xd0] sm:$0xff] %v734_v37  ;;  %v719_v40 = vmax.f32 %v625_v38, 0.0  ;;  %v735_v41 = vmax.f32 %v689_v39, 0.0  ;;  %v1001_v42 = vpop.f32.mrb[24].mxu0  ;;  %v1049_v43 = vpop.f32.mrb[24].mxu1 }
 0x18f   : > { %v1002_v44 = vpop.f32.mrb[25].mxu0  ;;  %v1050_v45 = vpop.f32.mrb[25].mxu1 }
 0x190   : > { %751 = vst [vmem:[%s1631_s18 + $0x58] sm:$0xff] %v719_v40  ;;  %767 = vst [vmem:[%s1631_s18 + $0xd8] sm:$0xff] %v735_v41  ;;  %v1003_v46 = vadd.f32 %v1002_v44, %v1001_v42  ;;  %v1051_v47 = vadd.f32 %v1050_v45, %v1049_v43  ;;  %v1004_v48 = vpop.f32.mrb[26].mxu0  ;;  %v1052_v49 = vpop.f32.mrb[26].mxu1 }
 0x191   : > { %v1005_v51 = vpop.f32.mrb[27].mxu0  ;;  %v1053_v52 = vpop.f32.mrb[27].mxu1 }
 0x192   : > { %v630_v53 = vadd.f32 %v1003_v46, %v1623_v50  ;;  %v694_v54 = vadd.f32 %v1051_v47, %v1623_v50  ;;  %v1006_v55 = vadd.f32 %v1005_v51, %v1004_v48  ;;  %v1054_v56 = vadd.f32 %v1053_v52, %v1052_v49 }
 0x194   : > { %v720_v57 = vmax.f32 %v630_v53, 0.0  ;;  %v736_v58 = vmax.f32 %v694_v54, 0.0  ;;  %v633_v59 = vadd.f32 %v1006_v55, %v1623_v50  ;;  %v697_v60 = vadd.f32 %v1054_v56, %v1623_v50 }
 0x196   : > { %752 = vst [vmem:[%s1631_s18 + $0x60] sm:$0xff] %v720_v57  ;;  %768 = vst [vmem:[%s1631_s18 + $0xe0] sm:$0xff] %v736_v58  ;;  %v721_v61 = vmax.f32 %v633_v59, 0.0  ;;  %v737_v62 = vmax.f32 %v697_v60, 0.0  ;;  %v1007_v63 = vpop.f32.mrb[28].mxu0  ;;  %v1055_v0 = vpop.f32.mrb[28].mxu1 }
 0x197   : > { %v1008_v1 = vpop.f32.mrb[29].mxu0  ;;  %v1056_v2 = vpop.f32.mrb[29].mxu1 }
 0x198   : > { %753 = vst [vmem:[%s1631_s18 + $0x68] sm:$0xff] %v721_v61  ;;  %769 = vst [vmem:[%s1631_s18 + $0xe8] sm:$0xff] %v737_v62  ;;  %v1009_v3 = vadd.f32 %v1008_v1, %v1007_v63  ;;  %v1057_v4 = vadd.f32 %v1056_v2, %v1055_v0  ;;  %v1010_v5 = vpop.f32.mrb[30].mxu0  ;;  %v1058_v6 = vpop.f32.mrb[30].mxu1 }
 0x199   : > { %v1011_v7 = vpop.f32.mrb[31].mxu0  ;;  %v1059_v8 = vpop.f32.mrb[31].mxu1 }
 0x19a   : > { %v638_v9 = vadd.f32 %v1009_v3, %v1623_v50  ;;  %v702_v10 = vadd.f32 %v1057_v4, %v1623_v50  ;;  %v1012_v11 = vadd.f32 %v1011_v7, %v1010_v5  ;;  %v1060_v12 = vadd.f32 %v1059_v8, %v1058_v6 }
 0x19c   : > { %v722_v13 = vmax.f32 %v638_v9, 0.0  ;;  %v738_v14 = vmax.f32 %v702_v10, 0.0  ;;  %v641_v15 = vadd.f32 %v1012_v11, %v1623_v50  ;;  %v705_v16 = vadd.f32 %v1060_v12, %v1623_v50 }
 0x19e   : > { %754 = vst [vmem:[%s1631_s18 + $0x70] sm:$0xff] %v722_v13  ;;  %770 = vst [vmem:[%s1631_s18 + $0xf0] sm:$0xff] %v738_v14  ;;  %v723_v17 = vmax.f32 %v641_v15, 0.0  ;;  %v739_v18 = vmax.f32 %v705_v16, 0.0 }
 0x1a0   : > { %755 = vst [vmem:[%s1631_s18 + $0x78] sm:$0xff] %v723_v17  ;;  %771 = vst [vmem:[%s1631_s18 + $0xf8] sm:$0xff] %v739_v18 }
 0x1a1   : > { %1313 = shalt.err (!%p1310_p2)
}
 0x1a2   : > { %s1314_s25 = scalar_lea.hbm %s1694_s28, 4096  ;;  %s1318_s24 = scalar_lea.hbm %s1747_s3, 8192 }
 0x1a3   : > { %p1315_p13 = scmp.ne.s32.totalorder %s1694_s28, %s1314_s25  ;;  %p1319_p4 = scmp.lt.u32.totalorder %s1694_s28, %s1747_s3 }
 0x1a4   : > { %p1320_p5 = scmp.lt.u32.totalorder %s1318_s24, %s1314_s25  ;;  %p1322_p11 = scmp.lt.u32.totalorder %s1314_s25, %s1694_s28 }
 0x1a5   : > { %p1316_p6 = pnand %p1315_p13, %p1761_p0 }
 0x1a6   : > { %p1321_p8 = por %p1320_p5, %p1319_p4 }
 0x1a7   : > { %p1317_p10 = pneg %p1316_p6 }
 0x1a8   : > { %p1323_p1 = por %p1322_p11, %p1321_p8 }
 0x1aa   : > { %p1324_p3 = pnand %p1323_p1, %p1317_p10 }
 0x1ac   : > { %1327 = shalt.err (!%p1324_p3)
}
 0x1ad   : > { %s1380_s4 = smov 128   ;;  %s1381_s18 = smov 8  }
 0x1ae   : > { %1087 = dma.vmem_to_hbm [thread:$0]  (%p1761_p0), %s1696_s21, 4096, %s1694_s28, %s773_s16, %s1380_s4, %s1380_s4, %s1381_s18  }
 0x1af PF: > { %s801_s20 = sand.u32 1, %s1358_s12   ;;  %p1762_p7 = scmp.ne.s32.totalorder %s1752_s19, 0 }
 0x1b0   : > { %p1763_p9 = scmp.ge.s32.totalorder %s1370_s15, 2  ;;  %s802_s26 = scalar_lea.sflag [#allocation4], %s801_s20 }
 0x1b2   : > { %p1101_p12 = pnand %p1763_p9, %p1762_p7 }
 0x1b4   : > { %1353 = dma.done.wait (!%p1101_p12), %s802_s26, 4096  }
 0x1b5   : > { %1355 = vsyncadd (!%p1101_p12), %s802_s26, 4294963200  ;;  %p17_p2 = scmp.ge.s32.totalorder %s1513_s5, 4   ;;  %s1764_s12 = smov %s1362_s13 }
 0x1b6   : > { %s1765_s13 = smov %s1366_s14  ;;  %s1766_s14 = smov %s1529_s8 }
 0x1b7   : > { %s1767_s15 = smov %s1513_s5  ;;  %19 = sbr.rel (!%p17_p2) target bundleno = 6 (0x6), region = 85 }
 0x1be   :  { %807 = vsyncpa [#allocation3], 1 }
 0x1bf   :  { %809 = vsyncpa [#allocation3 + $0x1], 1 }
 0x1c0   :  { %810 = vsyncpa [#allocation6], 1 }
 0x1c1   :  { %811 = vsyncpa [#allocation4], 1 }
 0x1c2   :  { %813 = vsyncpa [#allocation4 + $0x1], 1 }

// kernel: content_encoder_unet_forward.6
= control target key start
LH: loop header
LB: loop body
LE: loop exit
PB: predicated region body
PF: predicated region fallthrough
CT: control target
= control target key end

     0   :  { %8 = vsyncpa [#allocation3], 0  ;;  %s1081_s0 = inlined_call_operand.hbm [shape: bf16[128,384], index: 0, kind: input, shape index: {}]   ;;  %s1082_s1 = inlined_call_operand.hbm [shape: bf16[384,128], index: 1, kind: input, shape index: {}]   ;;  %s1083_s2 = inlined_call_operand.hbm [shape: f32[1,128], index: 2, kind: input, shape index: {}]   ;;  %s1084_s3 = inlined_call_operand.hbm [shape: f32[128,128], index: 3, kind: output, shape index: {}]  }
   0x1   :  { %9 = vsyncpa [#allocation6], 0 }
   0x2   :  { %10 = vsyncpa [#allocation4], 0  ;;  %s979_s12 = smov [#allocation5]   ;;  %s885_s16 = scalar_lea.hbm %s1082_s1, 3072 }
   0x3   :  { %s28_s13 = sshll.u32 %s979_s12, 4  ;;  %p886_p0 = scmp.ne.s32.totalorder %s1082_s1, %s885_s16  ;;  %s29_s13 = int_to_ptr.vmem [resolvable:$true] %s28_s13 }
   0x4   :  { %p889_p1 = scmp.lt.u32.totalorder %s885_s16, %s1082_s1 }
   0x6   :  { %p891_p2 = pnand %p889_p1, %p886_p0 }
   0x8   :  { %894 = shalt.err (!%p891_p2)
}
   0x9   :  { %s895_s21 = scalar_lea.vmem %s29_s13, 3072  ;;  %p900_p4 = scmp.lt.s32.totalorder %s29_s13, %s29_s13 }
   0xa   :  { %p896_p3 = scmp.ne.s32.totalorder %s29_s13, %s895_s21  ;;  %p901_p5 = scmp.lt.s32.totalorder %s895_s21, %s895_s21 }
   0xc   :  { %p902_p6 = por %p901_p5, %p900_p4 }
   0xe   :  { %p903_p7 = pnand %p902_p6, %p896_p3 }
  0x10   :  { %906 = shalt.err (!%p903_p7)
}
  0x11   :  { %s980_s22 = smov 64   ;;  %s981_s23 = smov 4  }
  0x12   :  { %34 = dma.hbm_to_vmem [thread:$0]  %s1082_s1, 3072, %s29_s13, [#allocation6], %s980_s22, %s980_s22, %s981_s23  }
  0x13   :  { %s982_s26 = smov [#allocation2]   ;;  %s907_s30 = scalar_lea.hbm %s1081_s0, 3072 }
  0x14   :  { %s16_s27 = sshll.u32 %s982_s26, 4  ;;  %p908_p8 = scmp.ne.s32.totalorder %s1081_s0, %s907_s30  ;;  %s17_s27 = int_to_ptr.vmem [resolvable:$true] %s16_s27 }
  0x15   :  { %p911_p9 = scmp.lt.u32.totalorder %s907_s30, %s1081_s0 }
  0x17   :  { %p913_p10 = pnand %p911_p9, %p908_p8 }
  0x19   :  { %916 = shalt.err (!%p913_p10)
}
  0x1a   :  { %s917_s8 = scalar_lea.vmem %s17_s27, 3072  ;;  %p922_p12 = scmp.lt.s32.totalorder %s17_s27, %s17_s27 }
  0x1b   :  { %p918_p11 = scmp.ne.s32.totalorder %s17_s27, %s917_s8  ;;  %p923_p13 = scmp.lt.s32.totalorder %s917_s8, %s917_s8 }
  0x1d   :  { %p924_p0 = por %p923_p13, %p922_p12 }
  0x1f   :  { %p925_p1 = pnand %p924_p0, %p918_p11 }
  0x21   :  { %928 = shalt.err (!%p925_p1)
}
  0x22   :  { %s983_s1 = smov 192   ;;  %s984_s9 = smov 12  }
  0x23   :  { %22 = dma.hbm_to_vmem [thread:$0]  %s1081_s0, 3072, %s17_s27, [#allocation3], %s983_s1, %s983_s1, %s984_s9  }
  0x24   :  { %s985_s12 = smov [#allocation7]   ;;  %s929_s16 = scalar_lea.hbm %s1083_s2, 16 }
  0x25   :  { %s41_s13 = sshll.u32 %s985_s12, 4  ;;  %p930_p2 = scmp.ne.s32.totalorder %s1083_s2, %s929_s16  ;;  %s42_s13 = int_to_ptr.vmem [resolvable:$true] %s41_s13 }
  0x26   :  { %p933_p3 = scmp.lt.u32.totalorder %s929_s16, %s1083_s2 }
  0x28   :  { %p935_p4 = pnand %p933_p3, %p930_p2 }
  0x2a   :  { %938 = shalt.err (!%p935_p4)
}
  0x2b   :  { %s939_s21 = scalar_lea.vmem %s42_s13, 16  ;;  %s943_s0 = scalar_lea.vmem %s42_s13, 32 }
  0x2c   :  { %p940_p5 = scmp.ne.s32.totalorder %s42_s13, %s939_s21  ;;  %p944_p6 = scmp.lt.s32.totalorder %s42_s13, %s42_s13 }
  0x2d   :  { %p945_p7 = scmp.lt.s32.totalorder %s943_s0, %s939_s21 }
  0x2f   :  { %p946_p8 = por %p945_p7, %p944_p6 }
  0x31   :  { %p947_p9 = pnand %p946_p8, %p940_p5 }
  0x33   :  { %950 = shalt.err (!%p947_p9)
}
  0x34   :  { %44 = dma.hbm_to_vmem [thread:$0]  %s1083_s2, 16, %s42_s13, [#allocation6]  }
  0x35   :  { %973 = dma.done.wait [#allocation3], 3072  }
  0x36   :  { %974 = vsyncadd [#allocation3], 4294964224 }
  0x37   :  { %975 = dma.done.wait [#allocation6], 3088  }
  0x38   :  { %976 = vsyncadd [#allocation6], 4294964208  ;;  %v829_v0 = vld [vmem:[#allocation5 + $0x40] sm:$0xff]   ;;  %v831_v2 = vld [vmem:[#allocation5 + $0x48] sm:$0xff]   ;;  %s986_s2 = smov [#allocation8]  }
  0x39   :  { %v830_v1 = vld [vmem:[#allocation5] sm:$0xff]   ;;  %707 = vmatprep.subr.bf16.mxu0 %v829_v0  ;;  %v833_v4 = vld [vmem:[#allocation5 + $0x8] sm:$0xff]   ;;  %v834_v5 = vld [vmem:[#allocation5 + $0x50] sm:$0xff]   ;;  %s645_s24 = sshll.u32 %s986_s2, 4  ;;  %s646_s24 = int_to_ptr.vmem [resolvable:$true] %s645_s24 }
  0x3a   :  { %708 = vmatpush3.bf16.msra.mxu0 %v830_v1  ;;  %v832_v3 = vld [vmem:[#allocation5 + $0x80] sm:$0xff]   ;;  %v835_v6 = vld [vmem:[#allocation5 + $0x88] sm:$0xff]   ;;  %v836_v7 = vld [vmem:[#allocation5 + $0x10] sm:$0xff]   ;;  %s951_s25 = scalar_lea.vmem %s646_s24, 2048  ;;  %p956_p11 = scmp.lt.s32.totalorder %s646_s24, %s646_s24 }
  0x3b   :  { %709 = vmatprep.subr.bf16.mxu0 %v831_v2  ;;  %787 = vmatprep.subr.bf16.mxu1 %v832_v3  ;;  %v837_v8 = vld [vmem:[#allocation5 + $0x58] sm:$0xff]   ;;  %v838_v9 = vld [vmem:[#allocation5 + $0x90] sm:$0xff]   ;;  %v840_v11 = vld [vmem:[#allocation5 + $0x60] sm:$0xff]   ;;  %p952_p10 = scmp.ne.s32.totalorder %s646_s24, %s951_s25  ;;  %p957_p12 = scmp.lt.s32.totalorder %s951_s25, %s951_s25 }
  0x3c   :  { %788 = vmatpush3.bf16.msra.mxu1 %v832_v3  ;;  %v839_v10 = vld [vmem:[#allocation5 + $0x18] sm:$0xff]   ;;  %v842_v13 = vld [vmem:[#allocation5 + $0x20] sm:$0xff]   ;;  %v843_v15 = vld [vmem:[#allocation5 + $0x68] sm:$0xff]  }
  0x3d   :  { %789 = vmatprep.subr.bf16.mxu1 %v835_v6  ;;  %v841_v12 = vld [vmem:[#allocation5 + $0x98] sm:$0xff]   ;;  %v844_v14 = vld [vmem:[#allocation5 + $0xa0] sm:$0xff]   ;;  %v845_v16 = vld [vmem:[#allocation5 + $0x28] sm:$0xff]   ;;  %p958_p13 = por %p957_p12, %p956_p11 }
  0x3e   :  { %710 = vmatpush3.bf16.msra.mxu0 %v833_v4  ;;  %v847_v17 = vld [vmem:[#allocation5 + $0xa8] sm:$0xff]   ;;  %v846_v18 = vld [vmem:[#allocation5 + $0x70] sm:$0xff]   ;;  %v849_v20 = vld [vmem:[#allocation5 + $0x78] sm:$0xff]  }
  0x3f   :  { %711 = vmatprep.subr.bf16.mxu0 %v834_v5  ;;  %v848_v19 = vld [vmem:[#allocation5 + $0x30] sm:$0xff]   ;;  %v851_v23 = vld [vmem:[#allocation5 + $0x38] sm:$0xff]   ;;  %v852_v26 = vld [vmem:[#allocation2] ss:$12 sps:$4 sm:$0xff]   ;;  %p959_p0 = pnand %p958_p13, %p952_p10 }
  0x40   :  { %790 = vmatpush3.bf16.msra.mxu1 %v835_v6  ;;  %v850_v21 = vld [vmem:[#allocation5 + $0xb0] sm:$0xff]   ;;  %v855_v25 = vld [vmem:[#allocation5 + $0xb8] sm:$0xff]   ;;  %v857_v28 = vld [vmem:[#allocation2 + $0x20] ss:$12 sps:$4 sm:$0xff]  }
  0x41   :  { %791 = vmatprep.subr.bf16.mxu1 %v838_v9  ;;  %v854_v22 = vld [vmem:[#allocation2 + $0x4] ss:$12 sps:$4 sm:$0xff]   ;;  %v856_v24 = vld [vmem:[#allocation2 + $0x8] ss:$12 sps:$4 sm:$0xff]   ;;  %v866_v35 = vld [vmem:[#allocation2 + $0x4c] ss:$12 sps:$4 sm:$0xff]  }
  0x42   :  { %712 = vmatpush3.bf16.msra.mxu0 %v836_v7  ;;  %446 = vmatprep.mubr.bf16.mxu0 %v854_v22  ;;  %v858_v27 = vld [vmem:[#allocation2 + $0x1c] ss:$12 sps:$4 sm:$0xff]   ;;  %v864_v29 = vld [vmem:[#allocation2 + $0x38] ss:$12 sps:$4 sm:$0xff]   ;;  %v861_v31 = vld [vmem:[#allocation2 + $0x34] ss:$12 sps:$4 sm:$0xff]  }
  0x43   :  { %713 = vmatprep.subr.bf16.mxu0 %v837_v8  ;;  %803 = vmatprep.mubr.bf16.mxu1 %v856_v24  ;;  %v860_v30 = vld [vmem:[#allocation2 + $0x18] ss:$12 sps:$4 sm:$0xff]   ;;  %v865_v32 = vld [vmem:[#allocation2 + $0x50] ss:$12 sps:$4 sm:$0xff]   ;;  %v872_v33 = vld [vmem:[#allocation2 + $0x68] ss:$12 sps:$4 sm:$0xff]  }
  0x44   :  { %792 = vmatpush3.bf16.msra.mxu1 %v838_v9  ;;  %v863_v34 = vld [vmem:[#allocation2 + $0x30] ss:$12 sps:$4 sm:$0xff]   ;;  %v873_v36 = vld [vmem:[#allocation2 + $0x80] ss:$12 sps:$4 sm:$0xff]   ;;  %v880_v37 = vld [vmem:[#allocation2 + $0x98] ss:$12 sps:$4 sm:$0xff]  }
  0x45   :  { %793 = vmatprep.subr.bf16.mxu1 %v841_v12  ;;  %v868_v38 = vld [vmem:[#allocation2 + $0x48] ss:$12 sps:$4 sm:$0xff]   ;;  %v869_v39 = vld [vmem:[#allocation2 + $0x64] ss:$12 sps:$4 sm:$0xff]   ;;  %v871_v41 = vld [vmem:[#allocation2 + $0x60] ss:$12 sps:$4 sm:$0xff]  }
  0x46   :  { %714 = vmatpush3.bf16.msra.mxu0 %v839_v10  ;;  %v881_v40 = vld [vmem:[#allocation2 + $0xb0] ss:$12 sps:$4 sm:$0xff]   ;;  %v876_v43 = vld [vmem:[#allocation2 + $0x78] ss:$12 sps:$4 sm:$0xff]   ;;  %v877_v44 = vld [vmem:[#allocation2 + $0x94] ss:$12 sps:$4 sm:$0xff]  }
  0x47   :  { %715 = vmatprep.subr.bf16.mxu0 %v840_v11  ;;  %v874_v42 = vld [vmem:[#allocation2 + $0x7c] ss:$12 sps:$4 sm:$0xff]   ;;  %v882_v46 = vld [vmem:[#allocation2 + $0xac] ss:$12 sps:$4 sm:$0xff]   ;;  %v1045_v50 = vld [vmem:[#allocation7] ss:$0 sm:$0xff] }
  0x48   :  { %794 = vmatpush3.bf16.msra.mxu1 %v841_v12  ;;  %v879_v45 = vld [vmem:[#allocation2 + $0x90] ss:$12 sps:$4 sm:$0xff]   ;;  %v884_v47 = vld [vmem:[#allocation2 + $0xa8] ss:$12 sps:$4 sm:$0xff]  }
  0x49   :  { %795 = vmatprep.subr.bf16.mxu1 %v844_v14 }
  0x4a   :  { %716 = vmatpush3.bf16.msra.mxu0 %v842_v13 }
  0x4b   :  { %717 = vmatprep.subr.bf16.mxu0 %v843_v15 }
  0x4c   :  { %796 = vmatpush3.bf16.msra.mxu1 %v844_v14 }
  0x4d   :  { %797 = vmatprep.subr.bf16.mxu1 %v847_v17 }
  0x4e   :  { %718 = vmatpush3.bf16.msra.mxu0 %v845_v16 }
  0x4f   :  { %719 = vmatprep.subr.bf16.mxu0 %v846_v18 }
  0x50   :  { %798 = vmatpush3.bf16.msra.mxu1 %v847_v17 }
  0x51   :  { %799 = vmatprep.subr.bf16.mxu1 %v850_v21 }
  0x52   :  { %720 = vmatpush3.bf16.msra.mxu0 %v848_v19 }
  0x53   :  { %721 = vmatprep.subr.bf16.mxu0 %v849_v20 }
  0x54   :  { %800 = vmatpush3.bf16.msra.mxu1 %v850_v21 }
  0x55   :  { %801 = vmatprep.subr.bf16.mxu1 %v855_v25 }
  0x56   :  { %722 = vmatpush3.bf16.msra.mxu0 %v851_v23 }
  0x58   :  { %802 = vmatpush3.bf16.msra.mxu1 %v855_v25 }
  0x59   :  { %447 = vmatmul.mubr.bf16.vlgmr.msra.gmra.mrb[0].mxu0 %v852_v26 }
  0x5a   :  { %454 = vmatprep.mubr.bf16.mxu0 %v858_v27 }
  0x5b   :  { %804 = vmatmul.mubr.bf16.vlgmr.msra.gmra.mrb[0].mxu1 %v857_v28 }
  0x5c   :  { %807 = vmatprep.mubr.bf16.mxu1 %v864_v29 }
  0x61   :  { %455 = vmatmul.mubr.bf16.gmra.mrb[4].mxu0 %v860_v30 }
  0x62   :  { %462 = vmatprep.mubr.bf16.mxu0 %v861_v31 }
  0x63   :  { %808 = vmatmul.mubr.bf16.gmra.mrb[4].mxu1 %v865_v32 }
  0x64   :  { %811 = vmatprep.mubr.bf16.mxu1 %v872_v33 }
  0x69   :  { %463 = vmatmul.mubr.bf16.gmra.mrb[8].mxu0 %v863_v34 }
  0x6a   :  { %470 = vmatprep.mubr.bf16.mxu0 %v866_v35 }
  0x6b   :  { %812 = vmatmul.mubr.bf16.gmra.mrb[8].mxu1 %v873_v36 }
  0x6c   :  { %815 = vmatprep.mubr.bf16.mxu1 %v880_v37 }
  0x71   :  { %471 = vmatmul.mubr.bf16.gmra.mrb[12].mxu0 %v868_v38 }
  0x72   :  { %478 = vmatprep.mubr.bf16.mxu0 %v869_v39 }
  0x73   :  { %816 = vmatmul.mubr.bf16.gmra.mrb[12].mxu1 %v881_v40 }
  0x79   :  { %479 = vmatmul.mubr.bf16.gmra.mrb[16].mxu0 %v871_v41 }
  0x7a   :  { %486 = vmatprep.mubr.bf16.mxu0 %v874_v42 }
  0x81   :  { %487 = vmatmul.mubr.bf16.gmra.mrb[20].mxu0 %v876_v43 }
  0x82   :  { %494 = vmatprep.mubr.bf16.mxu0 %v877_v44 }
  0x89   :  { %495 = vmatmul.mubr.bf16.gmra.mrb[24].mxu0 %v879_v45 }
  0x8a   :  { %502 = vmatprep.mubr.bf16.mxu0 %v882_v46 }
  0x91   :  { %503 = vmatmul.mubr.bf16.gmra.mrb[28].mxu0 %v884_v47 }
 0x12c   :  { %v723_v48 = vpop.f32.mrb[0].mxu0 }
 0x12d   :  { %v724_v49 = vpop.f32.mrb[1].mxu0 }
 0x12e   :  { %v725_v51 = vadd.f32 %v724_v49, %v723_v48  ;;  %v726_v52 = vpop.f32.mrb[2].mxu0  ;;  %v805_v54 = vpop.f32.mrb[0].mxu1 }
 0x12f   :  { %v727_v53 = vpop.f32.mrb[3].mxu0  ;;  %v545_v57 = vpop.f32.mrb[1].mxu1 }
 0x130   :  { %v728_v55 = vadd.f32 %v727_v53, %v726_v52  ;;  %v449_v56 = vadd.f32 %v725_v51, %v1045_v50  ;;  %v806_v58 = vpop.f32.mrb[2].mxu1 }
 0x131   :  { %v548_v61 = vpop.f32.mrb[3].mxu1 }
 0x132   :  { %v546_v59 = vadd.f32 %v545_v57, %v449_v56  ;;  %v452_v60 = vadd.f32 %v728_v55, %v1045_v50 }
 0x134   :  { %v608_v62 = vmax.f32 %v546_v59, 0.0  ;;  %v549_v63 = vadd.f32 %v548_v61, %v452_v60  ;;  %v729_v0 = vpop.f32.mrb[4].mxu0 }
 0x135   :  { %v730_v1 = vpop.f32.mrb[5].mxu0 }
 0x136   :  { %624 = vst [vmem:[#allocation8] sm:$0xff] %v608_v62  ;;  %v609_v2 = vmax.f32 %v549_v63, 0.0  ;;  %v731_v3 = vadd.f32 %v730_v1, %v729_v0  ;;  %v732_v4 = vpop.f32.mrb[6].mxu0  ;;  %v809_v6 = vpop.f32.mrb[4].mxu1 }
 0x137   :  { %v733_v5 = vpop.f32.mrb[7].mxu0  ;;  %v561_v9 = vpop.f32.mrb[5].mxu1 }
 0x138   :  { %625 = vst [vmem:[#allocation8 + $0x8] sm:$0xff] %v609_v2  ;;  %v457_v7 = vadd.f32 %v731_v3, %v1045_v50  ;;  %v734_v8 = vadd.f32 %v733_v5, %v732_v4  ;;  %v810_v10 = vpop.f32.mrb[6].mxu1 }
 0x139   :  { %v564_v13 = vpop.f32.mrb[7].mxu1 }
 0x13a   :  { %v554_v11 = vadd.f32 %v805_v54, %v457_v7  ;;  %v460_v12 = vadd.f32 %v734_v8, %v1045_v50 }
 0x13c   :  { %v610_v14 = vmax.f32 %v554_v11, 0.0  ;;  %v557_v15 = vadd.f32 %v806_v58, %v460_v12  ;;  %v735_v16 = vpop.f32.mrb[8].mxu0 }
 0x13d   :  { %v736_v17 = vpop.f32.mrb[9].mxu0 }
 0x13e   :  { %626 = vst [vmem:[#allocation8 + $0x10] sm:$0xff] %v610_v14  ;;  %v611_v18 = vmax.f32 %v557_v15, 0.0  ;;  %v737_v19 = vadd.f32 %v736_v17, %v735_v16  ;;  %v738_v20 = vpop.f32.mrb[10].mxu0  ;;  %v813_v22 = vpop.f32.mrb[8].mxu1 }
 0x13f   :  { %v739_v21 = vpop.f32.mrb[11].mxu0  ;;  %v577_v25 = vpop.f32.mrb[9].mxu1 }
 0x140   :  { %627 = vst [vmem:[#allocation8 + $0x18] sm:$0xff] %v611_v18  ;;  %v740_v23 = vadd.f32 %v739_v21, %v738_v20  ;;  %v465_v24 = vadd.f32 %v737_v19, %v1045_v50  ;;  %v814_v26 = vpop.f32.mrb[10].mxu1 }
 0x141   :  { %v580_v29 = vpop.f32.mrb[11].mxu1 }
 0x142   :  { %v562_v27 = vadd.f32 %v561_v9, %v465_v24  ;;  %v468_v28 = vadd.f32 %v740_v23, %v1045_v50 }
 0x144   :  { %v612_v30 = vmax.f32 %v562_v27, 0.0  ;;  %v565_v31 = vadd.f32 %v564_v13, %v468_v28  ;;  %v741_v32 = vpop.f32.mrb[12].mxu0 }
 0x145   :  { %v742_v33 = vpop.f32.mrb[13].mxu0 }
 0x146   :  { %628 = vst [vmem:[#allocation8 + $0x20] sm:$0xff] %v612_v30  ;;  %v613_v34 = vmax.f32 %v565_v31, 0.0  ;;  %v743_v35 = vadd.f32 %v742_v33, %v741_v32  ;;  %v744_v36 = vpop.f32.mrb[14].mxu0  ;;  %v1053_v38 = vpop.f32.mrb[12].mxu1 }
 0x147   :  { %v745_v37 = vpop.f32.mrb[15].mxu0  ;;  %v593_v41 = vpop.f32.mrb[13].mxu1 }
 0x148   :  { %629 = vst [vmem:[#allocation8 + $0x28] sm:$0xff] %v613_v34  ;;  %v473_v39 = vadd.f32 %v743_v35, %v1045_v50  ;;  %v746_v40 = vadd.f32 %v745_v37, %v744_v36  ;;  %v1056_v42 = vpop.f32.mrb[14].mxu1 }
 0x149   :  { %v596_v45 = vpop.f32.mrb[15].mxu1 }
 0x14a   :  { %v570_v43 = vadd.f32 %v809_v6, %v473_v39  ;;  %v476_v44 = vadd.f32 %v746_v40, %v1045_v50 }
 0x14c   :  { %v614_v46 = vmax.f32 %v570_v43, 0.0  ;;  %v573_v47 = vadd.f32 %v810_v10, %v476_v44  ;;  %v747_v48 = vpop.f32.mrb[16].mxu0 }
 0x14d   :  { %v748_v49 = vpop.f32.mrb[17].mxu0 }
 0x14e   :  { %630 = vst [vmem:[#allocation8 + $0x30] sm:$0xff] %v614_v46  ;;  %v615_v51 = vmax.f32 %v573_v47, 0.0  ;;  %v749_v52 = vadd.f32 %v748_v49, %v747_v48  ;;  %v750_v53 = vpop.f32.mrb[18].mxu0 }
 0x14f   :  { %v751_v54 = vpop.f32.mrb[19].mxu0 }
 0x150   :  { %631 = vst [vmem:[#allocation8 + $0x38] sm:$0xff] %v615_v51  ;;  %v752_v55 = vadd.f32 %v751_v54, %v750_v53  ;;  %v481_v56 = vadd.f32 %v749_v52, %v1045_v50 }
 0x152   :  { %v578_v57 = vadd.f32 %v577_v25, %v481_v56  ;;  %v484_v58 = vadd.f32 %v752_v55, %v1045_v50 }
 0x154   :  { %v616_v59 = vmax.f32 %v578_v57, 0.0  ;;  %v581_v60 = vadd.f32 %v580_v29, %v484_v58  ;;  %v753_v61 = vpop.f32.mrb[20].mxu0 }
 0x155   :  { %v754_v62 = vpop.f32.mrb[21].mxu0 }
 0x156   :  { %632 = vst [vmem:[#allocation8 + $0x40] sm:$0xff] %v616_v59  ;;  %v617_v63 = vmax.f32 %v581_v60, 0.0  ;;  %v755_v0 = vadd.f32 %v754_v62, %v753_v61  ;;  %v756_v1 = vpop.f32.mrb[22].mxu0 }
 0x157   :  { %v757_v2 = vpop.f32.mrb[23].mxu0 }
 0x158   :  { %633 = vst [vmem:[#allocation8 + $0x48] sm:$0xff] %v617_v63  ;;  %v489_v3 = vadd.f32 %v755_v0, %v1045_v50  ;;  %v758_v4 = vadd.f32 %v757_v2, %v756_v1 }
 0x15a   :  { %v586_v5 = vadd.f32 %v813_v22, %v489_v3  ;;  %v492_v6 = vadd.f32 %v758_v4, %v1045_v50 }
 0x15c   :  { %v618_v7 = vmax.f32 %v586_v5, 0.0  ;;  %v589_v8 = vadd.f32 %v814_v26, %v492_v6  ;;  %v759_v9 = vpop.f32.mrb[24].mxu0 }
 0x15d   :  { %v760_v10 = vpop.f32.mrb[25].mxu0 }
 0x15e   :  { %634 = vst [vmem:[#allocation8 + $0x50] sm:$0xff] %v618_v7  ;;  %v619_v11 = vmax.f32 %v589_v8, 0.0  ;;  %v761_v12 = vadd.f32 %v760_v10, %v759_v9  ;;  %v762_v13 = vpop.f32.mrb[26].mxu0 }
 0x15f   :  { %v763_v14 = vpop.f32.mrb[27].mxu0 }
 0x160   :  { %635 = vst [vmem:[#allocation8 + $0x58] sm:$0xff] %v619_v11  ;;  %v764_v15 = vadd.f32 %v763_v14, %v762_v13  ;;  %v497_v16 = vadd.f32 %v761_v12, %v1045_v50 }
 0x162   :  { %v594_v17 = vadd.f32 %v593_v41, %v497_v16  ;;  %v500_v18 = vadd.f32 %v764_v15, %v1045_v50 }
 0x164   :  { %v620_v19 = vmax.f32 %v594_v17, 0.0  ;;  %v597_v20 = vadd.f32 %v596_v45, %v500_v18  ;;  %v765_v21 = vpop.f32.mrb[28].mxu0 }
 0x165   :  { %v766_v22 = vpop.f32.mrb[29].mxu0 }
 0x166   :  { %636 = vst [vmem:[#allocation8 + $0x60] sm:$0xff] %v620_v19  ;;  %v621_v23 = vmax.f32 %v597_v20, 0.0  ;;  %v767_v24 = vadd.f32 %v766_v22, %v765_v21  ;;  %v768_v25 = vpop.f32.mrb[30].mxu0 }
 0x167   :  { %v769_v26 = vpop.f32.mrb[31].mxu0 }
 0x168   :  { %637 = vst [vmem:[#allocation8 + $0x68] sm:$0xff] %v621_v23  ;;  %v505_v27 = vadd.f32 %v767_v24, %v1045_v50  ;;  %v770_v28 = vadd.f32 %v769_v26, %v768_v25 }
 0x16a   :  { %v602_v29 = vadd.f32 %v1053_v38, %v505_v27  ;;  %v508_v30 = vadd.f32 %v770_v28, %v1045_v50 }
 0x16c   :  { %v622_v31 = vmax.f32 %v602_v29, 0.0  ;;  %v605_v32 = vadd.f32 %v1056_v42, %v508_v30 }
 0x16e   :  { %638 = vst [vmem:[#allocation8 + $0x70] sm:$0xff] %v622_v31  ;;  %v623_v33 = vmax.f32 %v605_v32, 0.0 }
 0x170   :  { %639 = vst [vmem:[#allocation8 + $0x78] sm:$0xff] %v623_v33 }
 0x171   :  { %962 = shalt.err (!%p959_p0)
}
 0x172   :  { %s963_s28 = scalar_lea.hbm %s1084_s3, 2048 }
 0x173   :  { %p964_p1 = scmp.ne.s32.totalorder %s1084_s3, %s963_s28  ;;  %p967_p2 = scmp.lt.u32.totalorder %s963_s28, %s1084_s3 }
 0x175   :  { %p969_p3 = pnand %p967_p2, %p964_p1 }
 0x177   :  { %972 = shalt.err (!%p969_p3)
}
 0x178   :  { %s987_s6 = smov 128   ;;  %s988_s7 = smov 8  }
 0x179   :  { %651 = dma.vmem_to_hbm [thread:$0]  %s646_s24, 2048, %s1084_s3, [#allocation4], %s987_s6, %s987_s6, %s988_s7  }
 0x17a   :  { %977 = dma.done.wait [#allocation4], 2048  }
 0x17b   :  { %978 = vsyncadd [#allocation4], 4294965248 }
 0x17c   :  { %655 = vsyncpa [#allocation3], 1 }
 0x17d   :  { %656 = vsyncpa [#allocation6], 1 }
 0x17e   :  { %657 = vsyncpa [#allocation4], 1 }

// kernel: content_encoder_unet_forward.7
= control target key start
LH: loop header
LB: loop body
LE: loop exit
PB: predicated region body
PF: predicated region fallthrough
CT: control target
= control target key end

     0   :  { %8 = vsyncpa [#allocation3], 0  ;;  %s992_s0 = inlined_call_operand.hbm [shape: bf16[32,640], index: 0, kind: input, shape index: {}]   ;;  %s993_s1 = inlined_call_operand.hbm [shape: bf16[640,128], index: 1, kind: input, shape index: {}]   ;;  %s994_s2 = inlined_call_operand.hbm [shape: f32[1,128], index: 2, kind: input, shape index: {}]   ;;  %s995_s3 = inlined_call_operand.hbm [shape: f32[32,128], index: 3, kind: output, shape index: {}]  }
   0x1   :  { %9 = vsyncpa [#allocation6], 0 }
   0x2   :  { %10 = vsyncpa [#allocation4], 0  ;;  %s914_s12 = smov [#allocation5]   ;;  %s820_s16 = scalar_lea.hbm %s993_s1, 5120 }
   0x3   :  { %s28_s13 = sshll.u32 %s914_s12, 4  ;;  %p821_p0 = scmp.ne.s32.totalorder %s993_s1, %s820_s16  ;;  %s29_s13 = int_to_ptr.vmem [resolvable:$true] %s28_s13 }
   0x4   :  { %p824_p1 = scmp.lt.u32.totalorder %s820_s16, %s993_s1 }
   0x6   :  { %p826_p2 = pnand %p824_p1, %p821_p0 }
   0x8   :  { %829 = shalt.err (!%p826_p2)
}
   0x9   :  { %s830_s21 = scalar_lea.vmem %s29_s13, 5120  ;;  %p835_p4 = scmp.lt.s32.totalorder %s29_s13, %s29_s13 }
   0xa   :  { %p831_p3 = scmp.ne.s32.totalorder %s29_s13, %s830_s21  ;;  %p836_p5 = scmp.lt.s32.totalorder %s830_s21, %s830_s21 }
   0xc   :  { %p837_p6 = por %p836_p5, %p835_p4 }
   0xe   :  { %p838_p7 = pnand %p837_p6, %p831_p3 }
  0x10   :  { %841 = shalt.err (!%p838_p7)
}
  0x11   :  { %s915_s22 = smov 64   ;;  %s916_s23 = smov 4  }
  0x12   :  { %34 = dma.hbm_to_vmem [thread:$0]  %s993_s1, 5120, %s29_s13, [#allocation6], %s915_s22, %s915_s22, %s916_s23  }
  0x13   :  { %s917_s26 = smov [#allocation2]   ;;  %s842_s30 = scalar_lea.hbm %s992_s0, 1280 }
  0x14   :  { %s16_s27 = sshll.u32 %s917_s26, 4  ;;  %p843_p8 = scmp.ne.s32.totalorder %s992_s0, %s842_s30  ;;  %s17_s27 = int_to_ptr.vmem [resolvable:$true] %s16_s27 }
  0x15   :  { %p846_p9 = scmp.lt.u32.totalorder %s842_s30, %s992_s0 }
  0x17   :  { %p848_p10 = pnand %p846_p9, %p843_p8 }
  0x19   :  { %851 = shalt.err (!%p848_p10)
}
  0x1a   :  { %s852_s8 = scalar_lea.vmem %s17_s27, 1280  ;;  %p857_p12 = scmp.lt.s32.totalorder %s17_s27, %s17_s27 }
  0x1b   :  { %p853_p11 = scmp.ne.s32.totalorder %s17_s27, %s852_s8  ;;  %p858_p13 = scmp.lt.s32.totalorder %s852_s8, %s852_s8 }
  0x1d   :  { %p859_p0 = por %p858_p13, %p857_p12 }
  0x1f   :  { %p860_p1 = pnand %p859_p0, %p853_p11 }
  0x21   :  { %863 = shalt.err (!%p860_p1)
}
  0x22   :  { %s918_s1 = smov 320   ;;  %s919_s9 = smov 20  }
  0x23   :  { %22 = dma.hbm_to_vmem [thread:$0]  %s992_s0, 1280, %s17_s27, [#allocation3], %s918_s1, %s918_s1, %s919_s9  }
  0x24   :  { %s920_s12 = smov [#allocation7]   ;;  %s864_s16 = scalar_lea.hbm %s994_s2, 16 }
  0x25   :  { %s41_s13 = sshll.u32 %s920_s12, 4  ;;  %p865_p2 = scmp.ne.s32.totalorder %s994_s2, %s864_s16  ;;  %s42_s13 = int_to_ptr.vmem [resolvable:$true] %s41_s13 }
  0x26   :  { %p868_p3 = scmp.lt.u32.totalorder %s864_s16, %s994_s2 }
  0x28   :  { %p870_p4 = pnand %p868_p3, %p865_p2 }
  0x2a   :  { %873 = shalt.err (!%p870_p4)
}
  0x2b   :  { %s874_s21 = scalar_lea.vmem %s42_s13, 16  ;;  %s878_s0 = scalar_lea.vmem %s42_s13, 32 }
  0x2c   :  { %p875_p5 = scmp.ne.s32.totalorder %s42_s13, %s874_s21  ;;  %p879_p6 = scmp.lt.s32.totalorder %s42_s13, %s42_s13 }
  0x2d   :  { %p880_p7 = scmp.lt.s32.totalorder %s878_s0, %s874_s21 }
  0x2f   :  { %p881_p8 = por %p880_p7, %p879_p6 }
  0x31   :  { %p882_p9 = pnand %p881_p8, %p875_p5 }
  0x33   :  { %885 = shalt.err (!%p882_p9)
}
  0x34   :  { %44 = dma.hbm_to_vmem [thread:$0]  %s994_s2, 16, %s42_s13, [#allocation6]  }
  0x35   :  { %908 = dma.done.wait [#allocation3], 1280  }
  0x36   :  { %909 = vsyncadd [#allocation3], 4294966016 }
  0x37   :  { %910 = dma.done.wait [#allocation6], 5136  }
  0x38   :  { %911 = vsyncadd [#allocation6], 4294962160  ;;  %v766_v0 = vld [vmem:[#allocation5 + $0x40] sm:$0xff]   ;;  %v770_v4 = vld [vmem:[#allocation5 + $0x48] sm:$0xff]   ;;  %s921_s2 = smov [#allocation8]  }
  0x39   :  { %v767_v1 = vld [vmem:[#allocation5] sm:$0xff]   ;;  %670 = vmatprep.subr.bf16.mxu0 %v766_v0  ;;  %v771_v5 = vld [vmem:[#allocation5 + $0x8] sm:$0xff]   ;;  %v774_v8 = vld [vmem:[#allocation5 + $0x50] sm:$0xff]   ;;  %s606_s24 = sshll.u32 %s921_s2, 4  ;;  %s607_s24 = int_to_ptr.vmem [resolvable:$true] %s606_s24 }
  0x3a   :  { %v768_v2 = vld [vmem:[#allocation5 + $0xc0] sm:$0xff]   ;;  %671 = vmatpush3.bf16.msra.mxu0 %v767_v1  ;;  %v772_v6 = vld [vmem:[#allocation5 + $0xc8] sm:$0xff]   ;;  %v775_v9 = vld [vmem:[#allocation5 + $0x10] sm:$0xff]   ;;  %s886_s25 = scalar_lea.vmem %s607_s24, 512  ;;  %p891_p11 = scmp.lt.s32.totalorder %s607_s24, %s607_s24 }
  0x3b   :  { %v769_v3 = vld [vmem:[#allocation5 + $0x80] sm:$0xff]   ;;  %698 = vmatprep.subr.bf16.mxu1 %v768_v2  ;;  %672 = vmatprep.subr.bf16.mxu0 %v770_v4  ;;  %v773_v7 = vld [vmem:[#allocation5 + $0x88] sm:$0xff]   ;;  %v776_v10 = vld [vmem:[#allocation5 + $0xd0] sm:$0xff]   ;;  %p887_p10 = scmp.ne.s32.totalorder %s607_s24, %s886_s25  ;;  %p892_p12 = scmp.lt.s32.totalorder %s886_s25, %s886_s25 }
  0x3c   :  { %699 = vmatpush3.bf16.msra.mxu1 %v769_v3  ;;  %v777_v11 = vld [vmem:[#allocation5 + $0x90] sm:$0xff]   ;;  %v778_v12 = vld [vmem:[#allocation5 + $0x58] sm:$0xff]   ;;  %v782_v16 = vld [vmem:[#allocation5 + $0x60] sm:$0xff]  }
  0x3d   :  { %700 = vmatprep.subr.bf16.mxu1 %v772_v6  ;;  %v779_v13 = vld [vmem:[#allocation5 + $0x18] sm:$0xff]   ;;  %v783_v17 = vld [vmem:[#allocation5 + $0x20] sm:$0xff]   ;;  %v786_v20 = vld [vmem:[#allocation5 + $0x68] sm:$0xff]   ;;  %p893_p13 = por %p892_p12, %p891_p11 }
  0x3e   :  { %673 = vmatpush3.bf16.msra.mxu0 %v771_v5  ;;  %v780_v14 = vld [vmem:[#allocation5 + $0xd8] sm:$0xff]   ;;  %v784_v18 = vld [vmem:[#allocation5 + $0xe0] sm:$0xff]   ;;  %v787_v21 = vld [vmem:[#allocation5 + $0x28] sm:$0xff]  }
  0x3f   :  { %674 = vmatprep.subr.bf16.mxu0 %v774_v8  ;;  %v781_v15 = vld [vmem:[#allocation5 + $0x98] sm:$0xff]   ;;  %v785_v19 = vld [vmem:[#allocation5 + $0xa0] sm:$0xff]   ;;  %v788_v22 = vld [vmem:[#allocation5 + $0xe8] sm:$0xff]   ;;  %p894_p0 = pnand %p893_p13, %p887_p10 }
  0x40   :  { %701 = vmatpush3.bf16.msra.mxu1 %v773_v7  ;;  %v789_v23 = vld [vmem:[#allocation5 + $0xa8] sm:$0xff]   ;;  %v790_v24 = vld [vmem:[#allocation5 + $0x70] sm:$0xff]   ;;  %v794_v28 = vld [vmem:[#allocation5 + $0x78] sm:$0xff]  }
  0x41   :  { %702 = vmatprep.subr.bf16.mxu1 %v776_v10  ;;  %v791_v25 = vld [vmem:[#allocation5 + $0x30] sm:$0xff]   ;;  %v795_v29 = vld [vmem:[#allocation5 + $0x38] sm:$0xff]   ;;  %v801_v34 = vld [vmem:[#allocation5 + $0x100] sm:$0xff]  }
  0x42   :  { %675 = vmatpush3.bf16.msra.mxu0 %v775_v9  ;;  %v792_v26 = vld [vmem:[#allocation5 + $0xf0] sm:$0xff]   ;;  %v796_v30 = vld [vmem:[#allocation5 + $0xf8] sm:$0xff]   ;;  %v805_v37 = vld [vmem:[#allocation5 + $0x108] sm:$0xff]  }
  0x43   :  { %676 = vmatprep.subr.bf16.mxu0 %v778_v12  ;;  %v793_v27 = vld [vmem:[#allocation5 + $0xb0] sm:$0xff]   ;;  %v800_v33 = vld [vmem:[#allocation5 + $0xb8] sm:$0xff]   ;;  %v808_v44 = vld [vmem:[#allocation5 + $0x120] sm:$0xff]  }
  0x44   :  { %703 = vmatpush3.bf16.msra.mxu1 %v777_v11  ;;  %v797_v31 = vld [vmem:[#allocation2] ss:$20 sps:$4 sm:$0xff]   ;;  %v799_v32 = vld [vmem:[#allocation2 + $0x4] ss:$20 sps:$4 sm:$0xff]   ;;  %v802_v35 = vld [vmem:[#allocation2 + $0x8] ss:$20 sps:$4 sm:$0xff]  }
  0x45   :  { %704 = vmatprep.subr.bf16.mxu1 %v780_v14  ;;  %478 = vmatprep.mubr.bf16.mxu0 %v799_v32  ;;  %v804_v36 = vld [vmem:[#allocation2 + $0xc] ss:$20 sps:$4 sm:$0xff]   ;;  %v812_v41 = vld [vmem:[#allocation2 + $0x28] ss:$20 sps:$4 sm:$0xff]   ;;  %v815_v43 = vld [vmem:[#allocation2 + $0x30] ss:$20 sps:$4 sm:$0xff]  }
  0x46   :  { %677 = vmatpush3.bf16.msra.mxu0 %v779_v13  ;;  %527 = vmatprep.mubr.bf16.mxu1 %v804_v36  ;;  %v806_v38 = vld [vmem:[#allocation5 + $0x110] sm:$0xff]   ;;  %v807_v40 = vld [vmem:[#allocation5 + $0x118] sm:$0xff]   ;;  %v811_v46 = vld [vmem:[#allocation5 + $0x128] sm:$0xff]  }
  0x47   :  { %678 = vmatprep.subr.bf16.mxu0 %v782_v16  ;;  %v809_v39 = vld [vmem:[#allocation2 + $0x2c] ss:$20 sps:$4 sm:$0xff]   ;;  %v813_v42 = vld [vmem:[#allocation2 + $0x34] ss:$20 sps:$4 sm:$0xff]   ;;  %v818_v45 = vld [vmem:[#allocation2 + $0x10] ss:$20 sps:$4 sm:$0xff]  }
  0x48   :  { %705 = vmatpush3.bf16.msra.mxu1 %v781_v15  ;;  %v816_v47 = vld [vmem:[#allocation5 + $0x130] sm:$0xff]   ;;  %v817_v48 = vld [vmem:[#allocation5 + $0x138] sm:$0xff]   ;;  %v619_v51 = vld [vmem:[#allocation7] ss:$0 sm:$0xff] }
  0x49   :  { %706 = vmatprep.subr.bf16.mxu1 %v784_v18  ;;  %v819_v49 = vld [vmem:[#allocation2 + $0x38] ss:$20 sps:$4 sm:$0xff]  }
  0x4a   :  { %679 = vmatpush3.bf16.msra.mxu0 %v783_v17 }
  0x4b   :  { %680 = vmatprep.subr.bf16.mxu0 %v786_v20 }
  0x4c   :  { %707 = vmatpush3.bf16.msra.mxu1 %v785_v19 }
  0x4d   :  { %708 = vmatprep.subr.bf16.mxu1 %v788_v22 }
  0x4e   :  { %681 = vmatpush3.bf16.msra.mxu0 %v787_v21 }
  0x4f   :  { %682 = vmatprep.subr.bf16.mxu0 %v790_v24 }
  0x50   :  { %709 = vmatpush3.bf16.msra.mxu1 %v789_v23 }
  0x51   :  { %710 = vmatprep.subr.bf16.mxu1 %v792_v26 }
  0x52   :  { %683 = vmatpush3.bf16.msra.mxu0 %v791_v25 }
  0x53   :  { %684 = vmatprep.subr.bf16.mxu0 %v794_v28 }
  0x54   :  { %711 = vmatpush3.bf16.msra.mxu1 %v793_v27 }
  0x55   :  { %712 = vmatprep.subr.bf16.mxu1 %v796_v30 }
  0x56   :  { %685 = vmatpush3.bf16.msra.mxu0 %v795_v29 }
  0x57   :  { %736 = vmatprep.subr.bf16.mxu0 %v801_v34 }
  0x58   :  { %713 = vmatpush3.bf16.msra.mxu1 %v800_v33 }
  0x59   :  { %479 = vmatmul.mubr.bf16.vlgmr.msra.gmra.mrb[0].mxu0 %v797_v31 }
  0x5a   :  { %737 = vmatpush3.bf16.msra.mxu0 %v801_v34  ;;  %486 = vmatprep.mubr.bf16.mxu0 %v809_v39 }
  0x5b   :  { %528 = vmatmul.mubr.bf16.vlgmr.msra.gmra.mrb[0].mxu1 %v802_v35  ;;  %738 = vmatprep.subr.bf16.mxu0 %v805_v37 }
  0x5c   :  { %535 = vmatprep.mubr.bf16.mxu1 %v813_v42 }
  0x5e   :  { %739 = vmatpush3.bf16.msra.mxu0 %v805_v37 }
  0x5f   :  { %740 = vmatprep.subr.bf16.mxu0 %v806_v38 }
  0x61   :  { %487 = vmatmul.mubr.bf16.gmra.mrb[4].mxu0 %v812_v41 }
  0x62   :  { %741 = vmatpush3.bf16.msra.mxu0 %v806_v38  ;;  %752 = vmatprep.mubr.bf16.mxu0 %v818_v45 }
  0x63   :  { %742 = vmatprep.subr.bf16.mxu0 %v807_v40  ;;  %536 = vmatmul.mubr.bf16.gmra.mrb[4].mxu1 %v815_v43 }
  0x66   :  { %743 = vmatpush3.bf16.msra.mxu0 %v807_v40 }
  0x67   :  { %744 = vmatprep.subr.bf16.mxu0 %v808_v44 }
  0x6a   :  { %745 = vmatpush3.bf16.msra.mxu0 %v808_v44 }
  0x6b   :  { %746 = vmatprep.subr.bf16.mxu0 %v811_v46 }
  0x6e   :  { %747 = vmatpush3.bf16.msra.mxu0 %v811_v46 }
  0x6f   :  { %748 = vmatprep.subr.bf16.mxu0 %v816_v47 }
  0x72   :  { %749 = vmatpush3.bf16.msra.mxu0 %v816_v47 }
  0x73   :  { %750 = vmatprep.subr.bf16.mxu0 %v817_v48 }
  0x76   :  { %751 = vmatpush3.bf16.msra.mxu0 %v817_v48 }
  0x79   :  { %753 = vmatmul.mubr.bf16.vlgmr.msra.gmra.mrb[8].mxu0 %v819_v49 }
 0x12c   :  { %v686_v50 = vpop.f32.mrb[0].mxu0 }
 0x12d   :  { %v687_v52 = vpop.f32.mrb[1].mxu0 }
 0x12e   :  { %v688_v53 = vadd.f32 %v687_v52, %v686_v50  ;;  %v689_v54 = vpop.f32.mrb[2].mxu0  ;;  %v714_v55 = vpop.f32.mrb[0].mxu1 }
 0x12f   :  { %v690_v56 = vpop.f32.mrb[3].mxu0  ;;  %v715_v59 = vpop.f32.mrb[1].mxu1 }
 0x130   :  { %v481_v57 = vadd.f32 %v688_v53, %v619_v51  ;;  %v691_v58 = vadd.f32 %v690_v56, %v689_v54  ;;  %v716_v60 = vadd.f32 %v715_v59, %v714_v55  ;;  %v717_v61 = vpop.f32.mrb[2].mxu1 }
 0x131   :  { %v718_v63 = vpop.f32.mrb[3].mxu1 }
 0x132   :  { %v484_v62 = vadd.f32 %v691_v58, %v619_v51  ;;  %v719_v0 = vadd.f32 %v718_v63, %v717_v61  ;;  %v530_v1 = vadd.f32 %v716_v60, %v481_v57 }
 0x134   :  { %v692_v2 = vpop.f32.mrb[4].mxu0  ;;  %v533_v4 = vadd.f32 %v719_v0, %v484_v62 }
 0x135   :  { %v693_v3 = vpop.f32.mrb[5].mxu0 }
 0x136   :  { %v694_v5 = vadd.f32 %v693_v3, %v692_v2  ;;  %v695_v6 = vpop.f32.mrb[6].mxu0  ;;  %v720_v7 = vpop.f32.mrb[4].mxu1 }
 0x137   :  { %v696_v8 = vpop.f32.mrb[7].mxu0  ;;  %v721_v11 = vpop.f32.mrb[5].mxu1 }
 0x138   :  { %v489_v9 = vadd.f32 %v694_v5, %v619_v51  ;;  %v697_v10 = vadd.f32 %v696_v8, %v695_v6  ;;  %v722_v12 = vadd.f32 %v721_v11, %v720_v7  ;;  %v723_v13 = vpop.f32.mrb[6].mxu1 }
 0x139   :  { %v724_v15 = vpop.f32.mrb[7].mxu1 }
 0x13a   :  { %v492_v14 = vadd.f32 %v697_v10, %v619_v51  ;;  %v725_v16 = vadd.f32 %v724_v15, %v723_v13  ;;  %v538_v17 = vadd.f32 %v722_v12, %v489_v9 }
 0x13c   :  { %v541_v18 = vadd.f32 %v725_v16, %v492_v14 }
 0x14c   :  { %v754_v19 = vpop.f32.mrb[8].mxu0 }
 0x14d   :  { %v587_v20 = vadd.f32 %v754_v19, %v538_v17  ;;  %v578_v21 = vpop.f32.mrb[9].mxu0 }
 0x14e   :  { %v579_v22 = vadd.f32 %v578_v21, %v530_v1  ;;  %v755_v23 = vpop.f32.mrb[10].mxu0 }
 0x14f   :  { %v595_v24 = vmax.f32 %v587_v20, 0.0  ;;  %v590_v25 = vadd.f32 %v755_v23, %v541_v18  ;;  %v581_v26 = vpop.f32.mrb[11].mxu0 }
 0x150   :  { %v593_v27 = vmax.f32 %v579_v22, 0.0  ;;  %v582_v28 = vadd.f32 %v581_v26, %v533_v4 }
 0x151   :  { %599 = vst [vmem:[#allocation8 + $0x10] sm:$0xff] %v595_v24  ;;  %v596_v29 = vmax.f32 %v590_v25, 0.0 }
 0x152   :  { %597 = vst [vmem:[#allocation8] sm:$0xff] %v593_v27  ;;  %v594_v30 = vmax.f32 %v582_v28, 0.0 }
 0x153   :  { %600 = vst [vmem:[#allocation8 + $0x18] sm:$0xff] %v596_v29 }
 0x154   :  { %598 = vst [vmem:[#allocation8 + $0x8] sm:$0xff] %v594_v30 }
 0x155   :  { %897 = shalt.err (!%p894_p0)
}
 0x156   :  { %s898_s28 = scalar_lea.hbm %s995_s3, 512 }
 0x157   :  { %p899_p1 = scmp.ne.s32.totalorder %s995_s3, %s898_s28  ;;  %p902_p2 = scmp.lt.u32.totalorder %s898_s28, %s995_s3 }
 0x159   :  { %p904_p3 = pnand %p902_p2, %p899_p1 }
 0x15b   :  { %907 = shalt.err (!%p904_p3)
}
 0x15c   :  { %s922_s6 = smov 128   ;;  %s923_s7 = smov 8  }
 0x15d   :  { %612 = dma.vmem_to_hbm [thread:$0]  %s607_s24, 512, %s995_s3, [#allocation4], %s922_s6, %s922_s6, %s923_s7  }
 0x15e   :  { %912 = dma.done.wait [#allocation4], 512  }
 0x15f   :  { %913 = vsyncadd [#allocation4], 4294966784 }
 0x160   :  { %616 = vsyncpa [#allocation3], 1 }
 0x161   :  { %617 = vsyncpa [#allocation6], 1 }
 0x162   :  { %618 = vsyncpa [#allocation4], 1 }

// kernel: content_encoder_unet_forward.8
= control target key start
LH: loop header
LB: loop body
LE: loop exit
PB: predicated region body
PF: predicated region fallthrough
CT: control target
= control target key end

     0   :  { %8 = vsyncpa [#allocation3], 0  ;;  %s721_s0 = inlined_call_operand.hbm [shape: bf16[32,384], index: 0, kind: input, shape index: {}]   ;;  %s722_s1 = inlined_call_operand.hbm [shape: bf16[384,128], index: 1, kind: input, shape index: {}]   ;;  %s723_s2 = inlined_call_operand.hbm [shape: f32[1,128], index: 2, kind: input, shape index: {}]   ;;  %s724_s3 = inlined_call_operand.hbm [shape: f32[32,128], index: 3, kind: output, shape index: {}]  }
   0x1   :  { %9 = vsyncpa [#allocation6], 0 }
   0x2   :  { %10 = vsyncpa [#allocation4], 0  ;;  %s643_s12 = smov [#allocation5]   ;;  %s549_s16 = scalar_lea.hbm %s722_s1, 3072 }
   0x3   :  { %s28_s13 = sshll.u32 %s643_s12, 4  ;;  %p550_p0 = scmp.ne.s32.totalorder %s722_s1, %s549_s16  ;;  %s29_s13 = int_to_ptr.vmem [resolvable:$true] %s28_s13 }
   0x4   :  { %p553_p1 = scmp.lt.u32.totalorder %s549_s16, %s722_s1 }
   0x6   :  { %p555_p2 = pnand %p553_p1, %p550_p0 }
   0x8   :  { %558 = shalt.err (!%p555_p2)
}
   0x9   :  { %s559_s21 = scalar_lea.vmem %s29_s13, 3072  ;;  %p564_p4 = scmp.lt.s32.totalorder %s29_s13, %s29_s13 }
   0xa   :  { %p560_p3 = scmp.ne.s32.totalorder %s29_s13, %s559_s21  ;;  %p565_p5 = scmp.lt.s32.totalorder %s559_s21, %s559_s21 }
   0xc   :  { %p566_p6 = por %p565_p5, %p564_p4 }
   0xe   :  { %p567_p7 = pnand %p566_p6, %p560_p3 }
  0x10   :  { %570 = shalt.err (!%p567_p7)
}
  0x11   :  { %s644_s22 = smov 64   ;;  %s645_s23 = smov 4  }
  0x12   :  { %34 = dma.hbm_to_vmem [thread:$0]  %s722_s1, 3072, %s29_s13, [#allocation6], %s644_s22, %s644_s22, %s645_s23  }
  0x13   :  { %s646_s26 = smov [#allocation2]   ;;  %s571_s30 = scalar_lea.hbm %s721_s0, 768 }
  0x14   :  { %s16_s27 = sshll.u32 %s646_s26, 4  ;;  %p572_p8 = scmp.ne.s32.totalorder %s721_s0, %s571_s30  ;;  %s17_s27 = int_to_ptr.vmem [resolvable:$true] %s16_s27 }
  0x15   :  { %p575_p9 = scmp.lt.u32.totalorder %s571_s30, %s721_s0 }
  0x17   :  { %p577_p10 = pnand %p575_p9, %p572_p8 }
  0x19   :  { %580 = shalt.err (!%p577_p10)
}
  0x1a   :  { %s581_s8 = scalar_lea.vmem %s17_s27, 768  ;;  %p586_p12 = scmp.lt.s32.totalorder %s17_s27, %s17_s27 }
  0x1b   :  { %p582_p11 = scmp.ne.s32.totalorder %s17_s27, %s581_s8  ;;  %p587_p13 = scmp.lt.s32.totalorder %s581_s8, %s581_s8 }
  0x1d   :  { %p588_p0 = por %p587_p13, %p586_p12 }
  0x1f   :  { %p589_p1 = pnand %p588_p0, %p582_p11 }
  0x21   :  { %592 = shalt.err (!%p589_p1)
}
  0x22   :  { %s647_s1 = smov 192   ;;  %s648_s9 = smov 12  }
  0x23   :  { %22 = dma.hbm_to_vmem [thread:$0]  %s721_s0, 768, %s17_s27, [#allocation3], %s647_s1, %s647_s1, %s648_s9  }
  0x24   :  { %s649_s12 = smov [#allocation7]   ;;  %s593_s16 = scalar_lea.hbm %s723_s2, 16 }
  0x25   :  { %s41_s13 = sshll.u32 %s649_s12, 4  ;;  %p594_p2 = scmp.ne.s32.totalorder %s723_s2, %s593_s16  ;;  %s42_s13 = int_to_ptr.vmem [resolvable:$true] %s41_s13 }
  0x26   :  { %p597_p3 = scmp.lt.u32.totalorder %s593_s16, %s723_s2 }
  0x28   :  { %p599_p4 = pnand %p597_p3, %p594_p2 }
  0x2a   :  { %602 = shalt.err (!%p599_p4)
}
  0x2b   :  { %s603_s21 = scalar_lea.vmem %s42_s13, 16  ;;  %s607_s0 = scalar_lea.vmem %s42_s13, 32 }
  0x2c   :  { %p604_p5 = scmp.ne.s32.totalorder %s42_s13, %s603_s21  ;;  %p608_p6 = scmp.lt.s32.totalorder %s42_s13, %s42_s13 }
  0x2d   :  { %p609_p7 = scmp.lt.s32.totalorder %s607_s0, %s603_s21 }
  0x2f   :  { %p610_p8 = por %p609_p7, %p608_p6 }
  0x31   :  { %p611_p9 = pnand %p610_p8, %p604_p5 }
  0x33   :  { %614 = shalt.err (!%p611_p9)
}
  0x34   :  { %44 = dma.hbm_to_vmem [thread:$0]  %s723_s2, 16, %s42_s13, [#allocation6]  }
  0x35   :  { %637 = dma.done.wait [#allocation3], 768  }
  0x36   :  { %638 = vsyncadd [#allocation3], 4294966528 }
  0x37   :  { %639 = dma.done.wait [#allocation6], 3088  }
  0x38   :  { %640 = vsyncadd [#allocation6], 4294964208  ;;  %v517_v0 = vld [vmem:[#allocation5 + $0x40] sm:$0xff]   ;;  %v519_v2 = vld [vmem:[#allocation5 + $0x48] sm:$0xff]   ;;  %s650_s2 = smov [#allocation8]  }
  0x39   :  { %v518_v1 = vld [vmem:[#allocation5] sm:$0xff]   ;;  %449 = vmatprep.subr.bf16.mxu0 %v517_v0  ;;  %v521_v4 = vld [vmem:[#allocation5 + $0x8] sm:$0xff]   ;;  %v522_v5 = vld [vmem:[#allocation5 + $0x50] sm:$0xff]   ;;  %s405_s24 = sshll.u32 %s650_s2, 4  ;;  %s406_s24 = int_to_ptr.vmem [resolvable:$true] %s405_s24 }
  0x3a   :  { %450 = vmatpush3.bf16.msra.mxu0 %v518_v1  ;;  %v520_v3 = vld [vmem:[#allocation5 + $0x80] sm:$0xff]   ;;  %v523_v6 = vld [vmem:[#allocation5 + $0x88] sm:$0xff]   ;;  %v524_v7 = vld [vmem:[#allocation5 + $0x10] sm:$0xff]   ;;  %s615_s25 = scalar_lea.vmem %s406_s24, 512  ;;  %p620_p11 = scmp.lt.s32.totalorder %s406_s24, %s406_s24 }
  0x3b   :  { %451 = vmatprep.subr.bf16.mxu0 %v519_v2  ;;  %487 = vmatprep.subr.bf16.mxu1 %v520_v3  ;;  %v525_v8 = vld [vmem:[#allocation5 + $0x58] sm:$0xff]   ;;  %v526_v9 = vld [vmem:[#allocation5 + $0x90] sm:$0xff]   ;;  %v528_v11 = vld [vmem:[#allocation5 + $0x60] sm:$0xff]   ;;  %p616_p10 = scmp.ne.s32.totalorder %s406_s24, %s615_s25  ;;  %p621_p12 = scmp.lt.s32.totalorder %s615_s25, %s615_s25 }
  0x3c   :  { %488 = vmatpush3.bf16.msra.mxu1 %v520_v3  ;;  %v527_v10 = vld [vmem:[#allocation5 + $0x18] sm:$0xff]   ;;  %v530_v13 = vld [vmem:[#allocation5 + $0x20] sm:$0xff]   ;;  %v531_v15 = vld [vmem:[#allocation5 + $0x68] sm:$0xff]  }
  0x3d   :  { %489 = vmatprep.subr.bf16.mxu1 %v523_v6  ;;  %v529_v12 = vld [vmem:[#allocation5 + $0x98] sm:$0xff]   ;;  %v532_v14 = vld [vmem:[#allocation5 + $0xa0] sm:$0xff]   ;;  %v533_v16 = vld [vmem:[#allocation5 + $0x28] sm:$0xff]   ;;  %p622_p13 = por %p621_p12, %p620_p11 }
  0x3e   :  { %452 = vmatpush3.bf16.msra.mxu0 %v521_v4  ;;  %v535_v17 = vld [vmem:[#allocation5 + $0xa8] sm:$0xff]   ;;  %v534_v18 = vld [vmem:[#allocation5 + $0x70] sm:$0xff]   ;;  %v537_v20 = vld [vmem:[#allocation5 + $0x78] sm:$0xff]  }
  0x3f   :  { %453 = vmatprep.subr.bf16.mxu0 %v522_v5  ;;  %v536_v19 = vld [vmem:[#allocation5 + $0x30] sm:$0xff]   ;;  %v539_v23 = vld [vmem:[#allocation5 + $0x38] sm:$0xff]   ;;  %v418_v32 = vld [vmem:[#allocation7] ss:$0 sm:$0xff]  ;;  %p623_p0 = pnand %p622_p13, %p616_p10 }
  0x40   :  { %490 = vmatpush3.bf16.msra.mxu1 %v523_v6  ;;  %v538_v21 = vld [vmem:[#allocation5 + $0xb0] sm:$0xff]   ;;  %v544_v24 = vld [vmem:[#allocation2 + $0x8] ss:$12 sps:$4 sm:$0xff]  }
  0x41   :  { %491 = vmatprep.subr.bf16.mxu1 %v526_v9  ;;  %v542_v22 = vld [vmem:[#allocation2 + $0x4] ss:$12 sps:$4 sm:$0xff]   ;;  %v543_v25 = vld [vmem:[#allocation5 + $0xb8] sm:$0xff]   ;;  %503 = vmatprep.mubr.bf16.mxu1 %v544_v24 }
  0x42   :  { %454 = vmatpush3.bf16.msra.mxu0 %v524_v7  ;;  %326 = vmatprep.mubr.bf16.mxu0 %v542_v22  ;;  %v540_v26 = vld [vmem:[#allocation2] ss:$12 sps:$4 sm:$0xff]   ;;  %v546_v27 = vld [vmem:[#allocation2 + $0x1c] ss:$12 sps:$4 sm:$0xff]   ;;  %v548_v29 = vld [vmem:[#allocation2 + $0x18] ss:$12 sps:$4 sm:$0xff]  }
  0x43   :  { %455 = vmatprep.subr.bf16.mxu0 %v525_v8  ;;  %v545_v28 = vld [vmem:[#allocation2 + $0x20] ss:$12 sps:$4 sm:$0xff]  }
  0x44   :  { %492 = vmatpush3.bf16.msra.mxu1 %v526_v9 }
  0x45   :  { %493 = vmatprep.subr.bf16.mxu1 %v529_v12 }
  0x46   :  { %456 = vmatpush3.bf16.msra.mxu0 %v527_v10 }
  0x47   :  { %457 = vmatprep.subr.bf16.mxu0 %v528_v11 }
  0x48   :  { %494 = vmatpush3.bf16.msra.mxu1 %v529_v12 }
  0x49   :  { %495 = vmatprep.subr.bf16.mxu1 %v532_v14 }
  0x4a   :  { %458 = vmatpush3.bf16.msra.mxu0 %v530_v13 }
  0x4b   :  { %459 = vmatprep.subr.bf16.mxu0 %v531_v15 }
  0x4c   :  { %496 = vmatpush3.bf16.msra.mxu1 %v532_v14 }
  0x4d   :  { %497 = vmatprep.subr.bf16.mxu1 %v535_v17 }
  0x4e   :  { %460 = vmatpush3.bf16.msra.mxu0 %v533_v16 }
  0x4f   :  { %461 = vmatprep.subr.bf16.mxu0 %v534_v18 }
  0x50   :  { %498 = vmatpush3.bf16.msra.mxu1 %v535_v17 }
  0x51   :  { %499 = vmatprep.subr.bf16.mxu1 %v538_v21 }
  0x52   :  { %462 = vmatpush3.bf16.msra.mxu0 %v536_v19 }
  0x53   :  { %463 = vmatprep.subr.bf16.mxu0 %v537_v20 }
  0x54   :  { %500 = vmatpush3.bf16.msra.mxu1 %v538_v21 }
  0x55   :  { %501 = vmatprep.subr.bf16.mxu1 %v543_v25 }
  0x56   :  { %464 = vmatpush3.bf16.msra.mxu0 %v539_v23 }
  0x58   :  { %502 = vmatpush3.bf16.msra.mxu1 %v543_v25 }
  0x59   :  { %327 = vmatmul.mubr.bf16.vlgmr.msra.gmra.mrb[0].mxu0 %v540_v26 }
  0x5a   :  { %334 = vmatprep.mubr.bf16.mxu0 %v546_v27 }
  0x5b   :  { %504 = vmatmul.mubr.bf16.vlgmr.msra.gmra.mrb[0].mxu1 %v545_v28 }
  0x61   :  { %335 = vmatmul.mubr.bf16.gmra.mrb[4].mxu0 %v548_v29 }
 0x12c   :  { %v465_v30 = vpop.f32.mrb[0].mxu0 }
 0x12d   :  { %v466_v31 = vpop.f32.mrb[1].mxu0 }
 0x12e   :  { %v467_v33 = vadd.f32 %v466_v31, %v465_v30  ;;  %v468_v34 = vpop.f32.mrb[2].mxu0  ;;  %v505_v36 = vpop.f32.mrb[0].mxu1 }
 0x12f   :  { %v469_v35 = vpop.f32.mrb[3].mxu0  ;;  %v377_v39 = vpop.f32.mrb[1].mxu1 }
 0x130   :  { %v470_v37 = vadd.f32 %v469_v35, %v468_v34  ;;  %v329_v38 = vadd.f32 %v467_v33, %v418_v32  ;;  %v506_v40 = vpop.f32.mrb[2].mxu1 }
 0x131   :  { %v380_v43 = vpop.f32.mrb[3].mxu1 }
 0x132   :  { %v378_v41 = vadd.f32 %v377_v39, %v329_v38  ;;  %v332_v42 = vadd.f32 %v470_v37, %v418_v32 }
 0x134   :  { %v392_v44 = vmax.f32 %v378_v41, 0.0  ;;  %v381_v45 = vadd.f32 %v380_v43, %v332_v42  ;;  %v471_v46 = vpop.f32.mrb[4].mxu0 }
 0x135   :  { %v472_v47 = vpop.f32.mrb[5].mxu0 }
 0x136   :  { %396 = vst [vmem:[#allocation8] sm:$0xff] %v392_v44  ;;  %v393_v48 = vmax.f32 %v381_v45, 0.0  ;;  %v473_v49 = vadd.f32 %v472_v47, %v471_v46  ;;  %v474_v50 = vpop.f32.mrb[6].mxu0 }
 0x137   :  { %v475_v51 = vpop.f32.mrb[7].mxu0 }
 0x138   :  { %397 = vst [vmem:[#allocation8 + $0x8] sm:$0xff] %v393_v48  ;;  %v337_v52 = vadd.f32 %v473_v49, %v418_v32  ;;  %v476_v53 = vadd.f32 %v475_v51, %v474_v50 }
 0x13a   :  { %v386_v54 = vadd.f32 %v505_v36, %v337_v52  ;;  %v340_v55 = vadd.f32 %v476_v53, %v418_v32 }
 0x13c   :  { %v394_v56 = vmax.f32 %v386_v54, 0.0  ;;  %v389_v57 = vadd.f32 %v506_v40, %v340_v55 }
 0x13e   :  { %398 = vst [vmem:[#allocation8 + $0x10] sm:$0xff] %v394_v56  ;;  %v395_v58 = vmax.f32 %v389_v57, 0.0 }
 0x140   :  { %399 = vst [vmem:[#allocation8 + $0x18] sm:$0xff] %v395_v58 }
 0x141   :  { %626 = shalt.err (!%p623_p0)
}
 0x142   :  { %s627_s28 = scalar_lea.hbm %s724_s3, 512 }
 0x143   :  { %p628_p1 = scmp.ne.s32.totalorder %s724_s3, %s627_s28  ;;  %p631_p2 = scmp.lt.u32.totalorder %s627_s28, %s724_s3 }
 0x145   :  { %p633_p3 = pnand %p631_p2, %p628_p1 }
 0x147   :  { %636 = shalt.err (!%p633_p3)
}
 0x148   :  { %s651_s6 = smov 128   ;;  %s652_s7 = smov 8  }
 0x149   :  { %411 = dma.vmem_to_hbm [thread:$0]  %s406_s24, 512, %s724_s3, [#allocation4], %s651_s6, %s651_s6, %s652_s7  }
 0x14a   :  { %641 = dma.done.wait [#allocation4], 512  }
 0x14b   :  { %642 = vsyncadd [#allocation4], 4294966784 }
 0x14c   :  { %415 = vsyncpa [#allocation3], 1 }
 0x14d   :  { %416 = vsyncpa [#allocation6], 1 }
 0x14e   :  { %417 = vsyncpa [#allocation4], 1 }

// kernel: content_encoder_unet_forward.9
= control target key start
LH: loop header
LB: loop body
LE: loop exit
PB: predicated region body
PF: predicated region fallthrough
CT: control target
= control target key end

     0   :  { %9 = vsyncpa [#allocation3], 0  ;;  %s799_s0 = inlined_call_operand.hbm [shape: bf16[32,384], index: 0, kind: input, shape index: {}]   ;;  %s800_s1 = inlined_call_operand.hbm [shape: bf16[384,128], index: 1, kind: input, shape index: {}]   ;;  %s801_s2 = inlined_call_operand.hbm [shape: f32[1,128], index: 2, kind: input, shape index: {}]   ;;  %s802_s3 = inlined_call_operand.hbm [shape: f32[32,128], index: 3, kind: input, shape index: {}]   ;;  %s803_s4 = inlined_call_operand.hbm [shape: f32[32,128], index: 4, kind: output, shape index: {}]  }
   0x1   :  { %10 = vsyncpa [#allocation6], 0 }
   0x2   :  { %11 = vsyncpa [#allocation9], 0 }
   0x3   :  { %12 = vsyncpa [#allocation4], 0  ;;  %s690_s15 = smov [#allocation5]   ;;  %s572_s19 = scalar_lea.hbm %s800_s1, 3072 }
   0x4   :  { %s30_s16 = sshll.u32 %s690_s15, 4  ;;  %p573_p0 = scmp.ne.s32.totalorder %s800_s1, %s572_s19  ;;  %s31_s16 = int_to_ptr.vmem [resolvable:$true] %s30_s16 }
   0x5   :  { %p576_p1 = scmp.lt.u32.totalorder %s572_s19, %s800_s1 }
   0x7   :  { %p578_p2 = pnand %p576_p1, %p573_p0 }
   0x9   :  { %581 = shalt.err (!%p578_p2)
}
   0xa   :  { %s582_s24 = scalar_lea.vmem %s31_s16, 3072  ;;  %p587_p4 = scmp.lt.s32.totalorder %s31_s16, %s31_s16 }
   0xb   :  { %p583_p3 = scmp.ne.s32.totalorder %s31_s16, %s582_s24  ;;  %p588_p5 = scmp.lt.s32.totalorder %s582_s24, %s582_s24 }
   0xd   :  { %p589_p6 = por %p588_p5, %p587_p4 }
   0xf   :  { %p590_p7 = pnand %p589_p6, %p583_p3 }
  0x11   :  { %593 = shalt.err (!%p590_p7)
}
  0x12   :  { %s691_s25 = smov 64   ;;  %s692_s26 = smov 4  }
  0x13   :  { %36 = dma.hbm_to_vmem [thread:$0]  %s800_s1, 3072, %s31_s16, [#allocation6], %s691_s25, %s691_s25, %s692_s26  }
  0x14   :  { %s693_s29 = smov [#allocation2]   ;;  %s594_s7 = scalar_lea.hbm %s799_s0, 768 }
  0x15   :  { %s18_s30 = sshll.u32 %s693_s29, 4  ;;  %p595_p8 = scmp.ne.s32.totalorder %s799_s0, %s594_s7  ;;  %s19_s30 = int_to_ptr.vmem [resolvable:$true] %s18_s30 }
  0x16   :  { %p598_p9 = scmp.lt.u32.totalorder %s594_s7, %s799_s0 }
  0x18   :  { %p600_p10 = pnand %p598_p9, %p595_p8 }
  0x1a   :  { %603 = shalt.err (!%p600_p10)
}
  0x1b   :  { %s604_s12 = scalar_lea.vmem %s19_s30, 768  ;;  %p609_p12 = scmp.lt.s32.totalorder %s19_s30, %s19_s30 }
  0x1c   :  { %p605_p11 = scmp.ne.s32.totalorder %s19_s30, %s604_s12  ;;  %p610_p13 = scmp.lt.s32.totalorder %s604_s12, %s604_s12 }
  0x1e   :  { %p611_p0 = por %p610_p13, %p609_p12 }
  0x20   :  { %p612_p1 = pnand %p611_p0, %p605_p11 }
  0x22   :  { %615 = shalt.err (!%p612_p1)
}
  0x23   :  { %s694_s1 = smov 192   ;;  %s695_s13 = smov 12  }
  0x24   :  { %24 = dma.hbm_to_vmem [thread:$0]  %s799_s0, 768, %s19_s30, [#allocation3], %s694_s1, %s694_s1, %s695_s13  }
  0x25   :  { %s696_s16 = smov [#allocation7]   ;;  %s697_s18 = smov [#allocation8]  }
  0x26   :  { %s43_s17 = sshll.u32 %s696_s16, 4  ;;  %s52_s19 = sshll.u32 %s697_s18, 4  ;;  %s44_s17 = int_to_ptr.vmem [resolvable:$true] %s43_s17  ;;  %s750_s19 = int_to_ptr.vmem [resolvable:$true] %s52_s19 }
  0x27   :  { %s616_s22 = scalar_lea.hbm %s801_s2, 16 }
  0x28   :  { %p617_p2 = scmp.ne.s32.totalorder %s801_s2, %s616_s22  ;;  %p620_p3 = scmp.lt.u32.totalorder %s616_s22, %s801_s2 }
  0x2a   :  { %p622_p4 = pnand %p620_p3, %p617_p2 }
  0x2c   :  { %625 = shalt.err (!%p622_p4)
}
  0x2d   :  { %s626_s0 = scalar_lea.vmem %s44_s17, 16  ;;  %s630_s27 = scalar_lea.vmem %s44_s17, 32 }
  0x2e   :  { %p627_p5 = scmp.ne.s32.totalorder %s44_s17, %s626_s0  ;;  %p631_p6 = scmp.lt.s32.totalorder %s44_s17, %s44_s17 }
  0x2f   :  { %p632_p7 = scmp.lt.s32.totalorder %s630_s27, %s626_s0 }
  0x31   :  { %p633_p8 = por %p632_p7, %p631_p6 }
  0x33   :  { %p634_p9 = pnand %p633_p8, %p627_p5 }
  0x35   :  { %637 = shalt.err (!%p634_p9)
}
  0x36   :  { %46 = dma.hbm_to_vmem [thread:$0]  %s801_s2, 16, %s44_s17, [#allocation6]  }
  0x37   :  { %s638_s6 = scalar_lea.hbm %s802_s3, 512 }
  0x38   :  { %p639_p10 = scmp.ne.s32.totalorder %s802_s3, %s638_s6  ;;  %p642_p11 = scmp.lt.u32.totalorder %s638_s6, %s802_s3 }
  0x3a   :  { %p644_p12 = pnand %p642_p11, %p639_p10 }
  0x3c   :  { %647 = shalt.err (!%p644_p12)
}
  0x3d   :  { %s648_s11 = scalar_lea.vmem %s750_s19, 512  ;;  %p653_p0 = scmp.lt.s32.totalorder %s750_s19, %s750_s19 }
  0x3e   :  { %p649_p13 = scmp.ne.s32.totalorder %s750_s19, %s648_s11  ;;  %p654_p1 = scmp.lt.s32.totalorder %s648_s11, %s648_s11 }
  0x40   :  { %p655_p2 = por %p654_p1, %p653_p0 }
  0x42   :  { %p656_p3 = pnand %p655_p2, %p649_p13 }
  0x44   :  { %659 = shalt.err (!%p656_p3)
}
  0x45   :  { %s698_s2 = smov 128   ;;  %s699_s12 = smov 8  }
  0x46   :  { %58 = dma.hbm_to_vmem [thread:$0]  %s802_s3, 512, %s750_s19, [#allocation9], %s698_s2, %s698_s2, %s699_s12  }
  0x47   :  { %682 = dma.done.wait [#allocation3], 768  }
  0x48   :  { %683 = vsyncadd [#allocation3], 4294966528 }
  0x49   :  { %684 = dma.done.wait [#allocation6], 3088  }
  0x4a   :  { %685 = vsyncadd [#allocation6], 4294964208 }
  0x4b   :  { %686 = dma.done.wait [#allocation9], 512  }
  0x4c   :  { %687 = vsyncadd [#allocation9], 4294966784  ;;  %v540_v0 = vld [vmem:[#allocation5 + $0x40] sm:$0xff]   ;;  %v542_v2 = vld [vmem:[#allocation5 + $0x48] sm:$0xff]   ;;  %s700_s3 = smov [#allocation10]  }
  0x4d   :  { %v541_v1 = vld [vmem:[#allocation5] sm:$0xff]   ;;  %471 = vmatprep.subr.bf16.mxu0 %v540_v0  ;;  %v544_v4 = vld [vmem:[#allocation5 + $0x8] sm:$0xff]   ;;  %v545_v5 = vld [vmem:[#allocation5 + $0x50] sm:$0xff]   ;;  %s426_s14 = sshll.u32 %s700_s3, 4  ;;  %s427_s14 = int_to_ptr.vmem [resolvable:$true] %s426_s14 }
  0x4e   :  { %472 = vmatpush3.bf16.msra.mxu0 %v541_v1  ;;  %v543_v3 = vld [vmem:[#allocation5 + $0x80] sm:$0xff]   ;;  %v546_v6 = vld [vmem:[#allocation5 + $0x88] sm:$0xff]   ;;  %v547_v7 = vld [vmem:[#allocation5 + $0x10] sm:$0xff]   ;;  %s660_s15 = scalar_lea.vmem %s427_s14, 512  ;;  %p665_p5 = scmp.lt.s32.totalorder %s427_s14, %s427_s14 }
  0x4f   :  { %473 = vmatprep.subr.bf16.mxu0 %v542_v2  ;;  %509 = vmatprep.subr.bf16.mxu1 %v543_v3  ;;  %v548_v8 = vld [vmem:[#allocation5 + $0x58] sm:$0xff]   ;;  %v549_v9 = vld [vmem:[#allocation5 + $0x90] sm:$0xff]   ;;  %v551_v11 = vld [vmem:[#allocation5 + $0x60] sm:$0xff]   ;;  %p661_p4 = scmp.ne.s32.totalorder %s427_s14, %s660_s15  ;;  %p666_p6 = scmp.lt.s32.totalorder %s660_s15, %s660_s15 }
  0x50   :  { %510 = vmatpush3.bf16.msra.mxu1 %v543_v3  ;;  %v550_v10 = vld [vmem:[#allocation5 + $0x18] sm:$0xff]   ;;  %v553_v13 = vld [vmem:[#allocation5 + $0x20] sm:$0xff]   ;;  %v554_v15 = vld [vmem:[#allocation5 + $0x68] sm:$0xff]  }
  0x51   :  { %511 = vmatprep.subr.bf16.mxu1 %v546_v6  ;;  %v552_v12 = vld [vmem:[#allocation5 + $0x98] sm:$0xff]   ;;  %v555_v14 = vld [vmem:[#allocation5 + $0xa0] sm:$0xff]   ;;  %v556_v16 = vld [vmem:[#allocation5 + $0x28] sm:$0xff]   ;;  %p667_p7 = por %p666_p6, %p665_p5 }
  0x52   :  { %474 = vmatpush3.bf16.msra.mxu0 %v544_v4  ;;  %v558_v17 = vld [vmem:[#allocation5 + $0xa8] sm:$0xff]   ;;  %v557_v18 = vld [vmem:[#allocation5 + $0x70] sm:$0xff]   ;;  %v560_v20 = vld [vmem:[#allocation5 + $0x78] sm:$0xff]  }
  0x53   :  { %475 = vmatprep.subr.bf16.mxu0 %v545_v5  ;;  %v559_v19 = vld [vmem:[#allocation5 + $0x30] sm:$0xff]   ;;  %v562_v23 = vld [vmem:[#allocation5 + $0x38] sm:$0xff]   ;;  %v440_v32 = vld [vmem:[#allocation7] ss:$0 sm:$0xff]  ;;  %p668_p8 = pnand %p667_p7, %p661_p4 }
  0x54   :  { %512 = vmatpush3.bf16.msra.mxu1 %v546_v6  ;;  %v561_v21 = vld [vmem:[#allocation5 + $0xb0] sm:$0xff]   ;;  %v567_v24 = vld [vmem:[#allocation2 + $0x8] ss:$12 sps:$4 sm:$0xff]  }
  0x55   :  { %513 = vmatprep.subr.bf16.mxu1 %v549_v9  ;;  %v565_v22 = vld [vmem:[#allocation2 + $0x4] ss:$12 sps:$4 sm:$0xff]   ;;  %v566_v25 = vld [vmem:[#allocation5 + $0xb8] sm:$0xff]   ;;  %525 = vmatprep.mubr.bf16.mxu1 %v567_v24  ;;  %v410_v45 = vld [vmem:[#allocation8 + $0x8] sm:$0xff] }
  0x56   :  { %476 = vmatpush3.bf16.msra.mxu0 %v547_v7  ;;  %343 = vmatprep.mubr.bf16.mxu0 %v565_v22  ;;  %v563_v26 = vld [vmem:[#allocation2] ss:$12 sps:$4 sm:$0xff]   ;;  %v569_v27 = vld [vmem:[#allocation2 + $0x1c] ss:$12 sps:$4 sm:$0xff]   ;;  %v571_v29 = vld [vmem:[#allocation2 + $0x18] ss:$12 sps:$4 sm:$0xff]  }
  0x57   :  { %477 = vmatprep.subr.bf16.mxu0 %v548_v8  ;;  %v568_v28 = vld [vmem:[#allocation2 + $0x20] ss:$12 sps:$4 sm:$0xff]   ;;  %v409_v40 = vld [vmem:[#allocation8] sm:$0xff] }
  0x58   :  { %514 = vmatpush3.bf16.msra.mxu1 %v549_v9  ;;  %v411_v56 = vld [vmem:[#allocation8 + $0x10] sm:$0xff]  ;;  %v412_v59 = vld [vmem:[#allocation8 + $0x18] sm:$0xff] }
  0x59   :  { %515 = vmatprep.subr.bf16.mxu1 %v552_v12 }
  0x5a   :  { %478 = vmatpush3.bf16.msra.mxu0 %v550_v10 }
  0x5b   :  { %479 = vmatprep.subr.bf16.mxu0 %v551_v11 }
  0x5c   :  { %516 = vmatpush3.bf16.msra.mxu1 %v552_v12 }
  0x5d   :  { %517 = vmatprep.subr.bf16.mxu1 %v555_v14 }
  0x5e   :  { %480 = vmatpush3.bf16.msra.mxu0 %v553_v13 }
  0x5f   :  { %481 = vmatprep.subr.bf16.mxu0 %v554_v15 }
  0x60   :  { %518 = vmatpush3.bf16.msra.mxu1 %v555_v14 }
  0x61   :  { %519 = vmatprep.subr.bf16.mxu1 %v558_v17 }
  0x62   :  { %482 = vmatpush3.bf16.msra.mxu0 %v556_v16 }
  0x63   :  { %483 = vmatprep.subr.bf16.mxu0 %v557_v18 }
  0x64   :  { %520 = vmatpush3.bf16.msra.mxu1 %v558_v17 }
  0x65   :  { %521 = vmatprep.subr.bf16.mxu1 %v561_v21 }
  0x66   :  { %484 = vmatpush3.bf16.msra.mxu0 %v559_v19 }
  0x67   :  { %485 = vmatprep.subr.bf16.mxu0 %v560_v20 }
  0x68   :  { %522 = vmatpush3.bf16.msra.mxu1 %v561_v21 }
  0x69   :  { %523 = vmatprep.subr.bf16.mxu1 %v566_v25 }
  0x6a   :  { %486 = vmatpush3.bf16.msra.mxu0 %v562_v23 }
  0x6c   :  { %524 = vmatpush3.bf16.msra.mxu1 %v566_v25 }
  0x6d   :  { %344 = vmatmul.mubr.bf16.vlgmr.msra.gmra.mrb[0].mxu0 %v563_v26 }
  0x6e   :  { %351 = vmatprep.mubr.bf16.mxu0 %v569_v27 }
  0x6f   :  { %526 = vmatmul.mubr.bf16.vlgmr.msra.gmra.mrb[0].mxu1 %v568_v28 }
  0x75   :  { %352 = vmatmul.mubr.bf16.gmra.mrb[4].mxu0 %v571_v29 }
 0x140   :  { %v487_v30 = vpop.f32.mrb[0].mxu0 }
 0x141   :  { %v488_v31 = vpop.f32.mrb[1].mxu0 }
 0x142   :  { %v489_v33 = vadd.f32 %v488_v31, %v487_v30  ;;  %v490_v34 = vpop.f32.mrb[2].mxu0  ;;  %v527_v36 = vpop.f32.mrb[0].mxu1 }
 0x143   :  { %v491_v35 = vpop.f32.mrb[3].mxu0  ;;  %v394_v39 = vpop.f32.mrb[1].mxu1 }
 0x144   :  { %v492_v37 = vadd.f32 %v491_v35, %v490_v34  ;;  %v346_v38 = vadd.f32 %v489_v33, %v440_v32  ;;  %v528_v41 = vpop.f32.mrb[2].mxu1 }
 0x145   :  { %v397_v44 = vpop.f32.mrb[3].mxu1 }
 0x146   :  { %v395_v42 = vadd.f32 %v394_v39, %v346_v38  ;;  %v349_v43 = vadd.f32 %v492_v37, %v440_v32 }
 0x148   :  { %v413_v46 = vadd.f32 %v409_v40, %v395_v42  ;;  %v398_v47 = vadd.f32 %v397_v44, %v349_v43  ;;  %v493_v48 = vpop.f32.mrb[4].mxu0 }
 0x149   :  { %v494_v49 = vpop.f32.mrb[5].mxu0 }
 0x14a   :  { %417 = vst [vmem:[#allocation10] sm:$0xff] %v413_v46  ;;  %v414_v50 = vadd.f32 %v410_v45, %v398_v47  ;;  %v495_v51 = vadd.f32 %v494_v49, %v493_v48  ;;  %v496_v52 = vpop.f32.mrb[6].mxu0 }
 0x14b   :  { %v497_v53 = vpop.f32.mrb[7].mxu0 }
 0x14c   :  { %418 = vst [vmem:[#allocation10 + $0x8] sm:$0xff] %v414_v50  ;;  %v354_v54 = vadd.f32 %v495_v51, %v440_v32  ;;  %v498_v55 = vadd.f32 %v497_v53, %v496_v52 }
 0x14e   :  { %v403_v57 = vadd.f32 %v527_v36, %v354_v54  ;;  %v357_v58 = vadd.f32 %v498_v55, %v440_v32 }
 0x150   :  { %v415_v60 = vadd.f32 %v411_v56, %v403_v57  ;;  %v406_v61 = vadd.f32 %v528_v41, %v357_v58 }
 0x152   :  { %419 = vst [vmem:[#allocation10 + $0x10] sm:$0xff] %v415_v60  ;;  %v416_v62 = vadd.f32 %v412_v59, %v406_v61 }
 0x154   :  { %420 = vst [vmem:[#allocation10 + $0x18] sm:$0xff] %v416_v62 }
 0x155   :  { %671 = shalt.err (!%p668_p8)
}
 0x156   :  { %s672_s18 = scalar_lea.hbm %s803_s4, 512 }
 0x157   :  { %p673_p9 = scmp.ne.s32.totalorder %s803_s4, %s672_s18  ;;  %p676_p10 = scmp.lt.u32.totalorder %s672_s18, %s803_s4 }
 0x159   :  { %p678_p11 = pnand %p676_p10, %p673_p9 }
 0x15b   :  { %681 = shalt.err (!%p678_p11)
}
 0x15c   :  { %432 = dma.vmem_to_hbm [thread:$0]  %s427_s14, 512, %s803_s4, [#allocation4], %s698_s2, %s698_s2, %s699_s12  }
 0x15d   :  { %688 = dma.done.wait [#allocation4], 512  }
 0x15e   :  { %689 = vsyncadd [#allocation4], 4294966784 }
 0x15f   :  { %436 = vsyncpa [#allocation3], 1 }
 0x160   :  { %437 = vsyncpa [#allocation6], 1 }
 0x161   :  { %438 = vsyncpa [#allocation9], 1 }
 0x162   :  { %439 = vsyncpa [#allocation4], 1 }

</bundles_post_ra>
